<compile_context>
chip_gen: v5e
topology: v5e:2x2
jax: 0.10.0
libtpu: 0.0.40
codegen_flags: <defaults>
</compile_context>

<pallas_src>
import math

import jax
import jax.numpy as jnp
from jax.experimental import pallas as pl
from jax.experimental.pallas import tpu as pltpu

_PACK = 8  # packed samples per lane-dense row


def pack_gabor_weights(weight, bias, pack=_PACK):
    """Build the lane-dense packed parameters once per weight update.

    weight: [out_f, in_f] f32, bias: [out_f] f32.
    Returns (w_bd [P*in_f, P*out_f] block-diagonal W.T, b_bd [1, P*out_f] tiled bias).
    """
    out_f, in_f = weight.shape
    w_bd = jnp.kron(jnp.eye(pack, dtype=weight.dtype), weight.T)
    b_bd = jnp.tile(bias, pack).reshape(1, pack * out_f)
    return w_bd, b_bd


def complex_gabor_layer_packed(x, w_bd, b_bd, omega0, sigma0, *, pack=_PACK,
                               block_rows=1024, bf16_transcendentals=False):
    """x: [B, in_f] f32; w_bd/b_bd from pack_gabor_weights.
    Returns complex64 [B, out_f] = exp(1j*omega0*lin - (sigma0*lin)**2)."""
    B, in_f = x.shape
    P = int(pack)
    pk_in = P * in_f
    lin_w = w_bd.shape[1]          # P * out_f
    out_f = lin_w // P
    assert w_bd.shape == (pk_in, lin_w) and b_bd.shape == (1, lin_w)
    out_w = 2 * lin_w              # fused (real | imag) output width

    omega0 = float(omega0)
    neg_sig2 = -(float(sigma0) ** 2)   # fold -(sigma0*lin)^2 = neg_sig2 * lin * lin

    # ---- lane-dense repacking: pad B only up to a multiple of P ---------------
    rows = -(-B // P)                  # ceil(B / P) == exact packed output rows
    B_pad = rows * P
    if B_pad != B:
        x = jnp.pad(x, ((0, B_pad - B), (0, 0)))
    x_p = x.reshape(rows, pk_in)

    # ---- tile size: large tiles, clamped inside scoped-VMEM defaults ----------
    bytes_per_row = 4 * (pk_in + out_w)
    vmem_budget = 12 * 1024 * 1024               # double-buffered working set cap
    max_rows = max(8, vmem_budget // (2 * bytes_per_row))
    br = min(int(block_rows), max_rows)
    br = max(8, (br // 8) * 8)
    if rows <= br:
        br = rows                                # single (possibly ragged) block
        n_blocks = 1
    else:
        n_blocks = -(-rows // br)                # ragged last block masked by Pallas

    # ---- kernel ---------------------------------------------------------------
    def gabor_kernel(x_ref, w_ref, b_ref, out_ref):
        # Linear layer on the MXU, Gabor nonlinearity on VPU/EUP, fused store.
        lin = jnp.dot(x_ref[...], w_ref[...], preferred_element_type=jnp.float32)
        lin = lin + b_ref[...]                   # (1, lin_w) broadcasts over rows
        if bf16_transcendentals:
            # v7x is ~EUP-bound here (3 transcendentals / element); bf16 roughly
            # halves that cost on v6e/v7x.  Off by default (accuracy ~1e-2).
            t = lin.astype(jnp.bfloat16)
            omega = omega0 * t
            gauss = jnp.exp(neg_sig2 * t * t)
            re = (gauss * jnp.cos(omega)).astype(jnp.float32)
            im = (gauss * jnp.sin(omega)).astype(jnp.float32)
        else:
            omega = omega0 * lin
            gauss = jnp.exp(neg_sig2 * (lin * lin))   # exp(-(sigma0*lin)^2)
            re = gauss * jnp.cos(omega)
            im = gauss * jnp.sin(omega)
        out_ref[:, :lin_w] = re                  # real plane (left half)
        out_ref[:, lin_w:] = im                  # imag plane (right half)

    cost = pl.CostEstimate(
        flops=2 * rows * pk_in * lin_w + 6 * rows * lin_w,
        transcendentals=3 * rows * lin_w,
        bytes_accessed=4 * (rows * pk_in + pk_in * lin_w + lin_w + rows * out_w),
    )

    out_packed = pl.pallas_call(
        gabor_kernel,
        out_shape=jax.ShapeDtypeStruct((rows, out_w), jnp.float32),
        grid_spec=pltpu.PrefetchScalarGridSpec(
            num_scalar_prefetch=0,
            grid=(n_blocks,),
            in_specs=[
                pl.BlockSpec((br, pk_in), lambda i: (i, 0)),      # x tile
                pl.BlockSpec((pk_in, lin_w), lambda i: (0, 0)),   # block-diag W.T (resident)
                pl.BlockSpec((1, lin_w), lambda i: (0, 0)),       # tiled bias (resident)
            ],
            out_specs=pl.BlockSpec((br, out_w), lambda i: (i, 0)),
        ),
        compiler_params=pltpu.CompilerParams(
            dimension_semantics=("parallel",)),
        cost_estimate=cost,
    )(x_p, w_bd, b_bd)

    # Epilogue: left half = real, right half = imag; each (rows, lin_w) is a
    # row-major view of [B_pad, out_f].  Slice + reshape + complex is one XLA
    # fusion; the extra [:B] copy only exists when B % P != 0.
    real = out_packed[:, :lin_w].reshape(B_pad, out_f)
    imag = out_packed[:, lin_w:].reshape(B_pad, out_f)
    if B_pad != B:
        real, imag = real[:B], imag[:B]
    return jax.lax.complex(real, imag)


def complex_gabor_layer(x, weight, bias, omega0, sigma0, **kwargs):
    """Convenience wrapper; for repeated calls, pack the weights once instead."""
    w_bd, b_bd = pack_gabor_weights(weight, bias, kwargs.get("pack", _PACK))
    return complex_gabor_layer_packed(x, w_bd, b_bd, omega0, sigma0, **kwargs)


def reference(x, weight, bias, omega0, sigma0):
    lin = x @ weight.T + bias
    omega = omega0 * lin
    scale = sigma0 * lin
    return jnp.exp(1j * omega.astype(jnp.complex64) - (scale * scale))


if __name__ == "__main__":
    # Module config (is_first=True => real Linear), deterministic init, small shapes.
    in_features = 16
    out_features = 32
    batch = 250           # not a multiple of pack=8 -> exercises pad + final slice
    omega0 = 10.0
    sigma0 = 40.0

    key = jax.random.PRNGKey(0)
    kx, kw, kb = jax.random.split(key, 3)

    # nn.Linear default init: U(-1/sqrt(in), 1/sqrt(in)) for weight and bias.
    bound = 1.0 / math.sqrt(in_features)
    weight = jax.random.uniform(kw, (out_features, in_features), jnp.float32,
                                minval=-bound, maxval=bound)
    bias = jax.random.uniform(kb, (out_features,), jnp.float32,
                              minval=-bound, maxval=bound)
    x = jax.random.uniform(kx, (batch, in_features), jnp.float32,
                           minval=-1.0, maxval=1.0)

    # Pack the weights once (hoisted out of the per-call path), run the kernel once.
    w_bd, b_bd = pack_gabor_weights(weight, bias)
    out = complex_gabor_layer_packed(x, w_bd, b_bd, omega0, sigma0)
    out = jax.block_until_ready(out)

    ref = reference(x, weight, bias, omega0, sigma0)
    assert out.shape == (batch, out_features) and out.dtype == jnp.complex64
    assert jnp.allclose(out, ref, atol=1e-5, rtol=1e-5), "mismatch vs reference"

    print("KERNEL_OK")
</pallas_src>

<mosaic_0001>
module attributes {stable_mosaic.version = 11 : i64} {
  func.func @gabor_kernel(%arg0: i32, %arg1: memref<32x128xf32, #tpu.memory_space<vmem>>, %arg2: memref<128x256xf32, #tpu.memory_space<vmem>>, %arg3: memref<1x256xf32, #tpu.memory_space<vmem>>, %arg4: memref<32x512xf32, #tpu.memory_space<vmem>>) attributes {dimension_semantics = [#tpu.dimension_semantics<parallel>], iteration_bounds = array<i64: 1>, scalar_prefetch = 0 : i64, scratch_operands = 0 : i64, tpu.core_type = #tpu.core_type<tc>, window_params = [{transform_indices = @transform_0, window_bounds = array<i64: 32, 128>}, {pipeline_mode = #tpu.pipeline_mode<synchronous>, transform_indices = @transform_1, window_bounds = array<i64: 128, 256>}, {pipeline_mode = #tpu.pipeline_mode<synchronous>, transform_indices = @transform_2, window_bounds = array<i64: 1, 256>}, {transform_indices = @transform_3, window_bounds = array<i64: 32, 512>}]} {
    %c0 = arith.constant 0 : index
    %c0_0 = arith.constant 0 : index
    %0 = vector.load %arg1[%c0, %c0_0] : memref<32x128xf32, #tpu.memory_space<vmem>>, vector<32x128xf32>
    %c0_1 = arith.constant 0 : index
    %c0_2 = arith.constant 0 : index
    %1 = vector.load %arg2[%c0_1, %c0_2] : memref<128x256xf32, #tpu.memory_space<vmem>>, vector<128x256xf32>
    %cst = arith.constant dense<0.000000e+00> : vector<32x256xf32>
    %2 = tpu.matmul %0, %1, %cst {dimension_numbers = #tpu.dot_dimension_numbers<[1], [0], [0], [1], [0, 0, 1, 1], [], []>} : vector<32x128xf32>, vector<128x256xf32>, vector<32x256xf32> -> vector<32x256xf32>
    %c0_3 = arith.constant 0 : index
    %c0_4 = arith.constant 0 : index
    %3 = vector.load %arg3[%c0_3, %c0_4] : memref<1x256xf32, #tpu.memory_space<vmem>>, vector<1x256xf32>
    %4 = vector.broadcast %3 : vector<1x256xf32> to vector<32x256xf32>
    %5 = arith.addf %2, %4 : vector<32x256xf32>
    %cst_5 = arith.constant 1.000000e+01 : f32
    %6 = vector.broadcast %cst_5 : f32 to vector<32x256xf32>
    %7 = arith.mulf %6, %5 : vector<32x256xf32>
    %8 = arith.mulf %5, %5 : vector<32x256xf32>
    %cst_6 = arith.constant -1.600000e+03 : f32
    %9 = vector.broadcast %cst_6 : f32 to vector<32x256xf32>
    %10 = arith.mulf %9, %8 : vector<32x256xf32>
    %11 = math.exp %10 : vector<32x256xf32>
    %12 = math.cos %7 : vector<32x256xf32>
    %13 = arith.mulf %11, %12 : vector<32x256xf32>
    %14 = math.sin %7 : vector<32x256xf32>
    %15 = arith.mulf %11, %14 : vector<32x256xf32>
    %c0_7 = arith.constant 0 : index
    %c0_8 = arith.constant 0 : index
    %16 = vector.load %arg4[%c0_7, %c0_8] : memref<32x512xf32, #tpu.memory_space<vmem>>, vector<32x256xf32>
    tpu.vector_store %arg4[%c0_7, %c0_8], %13 {strides = array<i32>} : memref<32x512xf32, #tpu.memory_space<vmem>>, vector<32x256xf32>,
    %c0_9 = arith.constant 0 : index
    %c256 = arith.constant 256 : index
    %17 = vector.load %arg4[%c0_9, %c256] : memref<32x512xf32, #tpu.memory_space<vmem>>, vector<32x256xf32>
    tpu.vector_store %arg4[%c0_9, %c256], %15 {strides = array<i32>} : memref<32x512xf32, #tpu.memory_space<vmem>>, vector<32x256xf32>,
    return
  }
  func.func @transform_0(%arg0: i32) -> (i32, i32) {
    %c0_i32 = arith.constant 0 : i32
    %c0_i32_0 = arith.constant 0 : i32
    return %arg0, %c0_i32 : i32, i32
  }
  func.func @transform_1(%arg0: i32) -> (i32, i32) {
    %c0_i32 = arith.constant 0 : i32
    %c0_i32_0 = arith.constant 0 : i32
    %c0_i32_1 = arith.constant 0 : i32
    return %c0_i32, %c0_i32_0 : i32, i32
  }
  func.func @transform_2(%arg0: i32) -> (i32, i32) {
    %c0_i32 = arith.constant 0 : i32
    %c0_i32_0 = arith.constant 0 : i32
    %c0_i32_1 = arith.constant 0 : i32
    return %c0_i32, %c0_i32_0 : i32, i32
  }
  func.func @transform_3(%arg0: i32) -> (i32, i32) {
    %c0_i32 = arith.constant 0 : i32
    %c0_i32_0 = arith.constant 0 : i32
    return %arg0, %c0_i32 : i32, i32
  }
}

</mosaic_0001>

<bundles_post_ra>
// kernel: tpu_custom_call.1
= control target key start
LH: loop header
LB: loop body
LE: loop exit
PB: predicated region body
PF: predicated region fallthrough
CT: control target
= control target key end

     0   :  { %8 = vsyncpa [#allocation3], 0  ;;  %s3970_s0 = inlined_call_operand.hbm [shape: f32[32,128], index: 0, kind: input, shape index: {}]   ;;  %s3971_s1 = inlined_call_operand.hbm [shape: f32[128,256], index: 1, kind: input, shape index: {}]   ;;  %s3972_s2 = inlined_call_operand.hbm [shape: f32[1,256], index: 2, kind: input, shape index: {}]   ;;  %s3973_s3 = inlined_call_operand.hbm [shape: f32[32,512], index: 3, kind: output, shape index: {}]  }
   0x1   :  { %9 = vsyncpa [#allocation6], 0  ;;  %s28_s14 = sshll.u32 %s3971_s1, 4  ;;  %s29_s14 = int_to_ptr.hbm [resolvable:$true] %s28_s14 }
   0x2   :  { %10 = vsyncpa [#allocation4], 0  ;;  %s2939_s15 = smov [#allocation5]   ;;  %s15_s19 = sshll.u32 %s3970_s0, 4  ;;  %s16_s19 = int_to_ptr.hbm [resolvable:$true] %s15_s19 }
   0x3   :  { %s30_s16 = sshll.u32 %s2939_s15, 4  ;;  %s2940_s20 = smov 256   ;;  %s31_s16 = int_to_ptr.vmem [resolvable:$true] %s30_s16 }
   0x4   :  { %s2941_s21 = smov 16   ;;  %s2942_s22 = smov [#allocation2]  }
   0x5   :  { %36 = dma.hbm_to_vmem [thread:$0]  %s29_s14, 4096, %s31_s16, [#allocation6], %s2940_s20, %s2940_s20, %s2941_s21  }
   0x6   :  { %s17_s23 = sshll.u32 %s2942_s22, 4  ;;  %s2943_s24 = smov 128   ;;  %s18_s23 = int_to_ptr.vmem [resolvable:$true] %s17_s23 }
   0x7   :  { %s2944_s25 = smov 8   ;;  %s42_s27 = sshll.u32 %s3972_s2, 4  ;;  %s43_s27 = int_to_ptr.hbm [resolvable:$true] %s42_s27 }
   0x8   :  { %23 = dma.hbm_to_vmem [thread:$0]  %s16_s19, 512, %s18_s23, [#allocation3], %s2943_s24, %s2943_s24, %s2944_s25  }
   0x9   :  { %s2945_s28 = smov [#allocation7]  }
   0xa   :  { %s44_s29 = sshll.u32 %s2945_s28, 4  ;;  %s45_s29 = int_to_ptr.vmem [resolvable:$true] %s44_s29 }
   0xb   :  { %47 = dma.hbm_to_vmem [thread:$0]  %s43_s27, 32, %s45_s29, [#allocation6]  }
   0xc   :  { %2933 = dma.done.wait [#allocation3], 512  }
   0xd   :  { %2934 = vsyncadd [#allocation3], 4294966784 }
   0xe   :  { %2935 = dma.done.wait [#allocation6], 4128  }
   0xf   :  { %2936 = vsyncadd [#allocation6], 4294963168  ;;  %v94_v0 = vld [vmem:[#allocation5 + $0xf0] sm:$0xff]  ;;  %v95_v1 = vld [vmem:[#allocation5 + $0xf8] sm:$0xff]  ;;  %s2953_s0 = smov [#allocation8]   ;;  %s2710_s5 = sshll.u32 %s3973_s3, 4  ;;  %s2711_s5 = int_to_ptr.hbm [resolvable:$true] %s2710_s5 }
  0x10   :  { %v92_v2 = vld [vmem:[#allocation5 + $0xe0] sm:$0xff]  ;;  %102 = vmatpush.msra.mxu0 %v94_v0  ;;  %2772 = vmatpush.msra.mxu2 %v94_v0  ;;  %v93_v3 = vld [vmem:[#allocation5 + $0xe8] sm:$0xff]  ;;  %v90_v4 = vld [vmem:[#allocation5 + $0xd0] sm:$0xff]  ;;  %v2946_v0 = vmov 683565275   ;;  %s2708_s2 = sshll.u32 %s2953_s0, 4  ;;  %s2709_s2 = int_to_ptr.vmem [resolvable:$true] %s2708_s2 }
  0x11   :  { %131 = vmatpush.msra.mxu1 %v95_v1  ;;  %2788 = vmatpush.msra.mxu3 %v95_v1  ;;  %v91_v5 = vld [vmem:[#allocation5 + $0xd8] sm:$0xff]  ;;  %v88_v6 = vld [vmem:[#allocation5 + $0xc0] sm:$0xff]  ;;  %v89_v7 = vld [vmem:[#allocation5 + $0xc8] sm:$0xff]  ;;  %s2954_s6 = smov 512   ;;  %s2955_s7 = smov 32  }
  0x12   :  { %103 = vmatpush.msra.mxu0 %v92_v2  ;;  %2773 = vmatpush.msra.mxu2 %v92_v2  ;;  %v86_v8 = vld [vmem:[#allocation5 + $0xb0] sm:$0xff]  ;;  %v87_v9 = vld [vmem:[#allocation5 + $0xb8] sm:$0xff]  ;;  %v84_v10 = vld [vmem:[#allocation5 + $0xa0] sm:$0xff]  ;;  %v2947_v2 = vmov 2475754826  }
  0x13   :  { %132 = vmatpush.msra.mxu1 %v93_v3  ;;  %2789 = vmatpush.msra.mxu3 %v93_v3  ;;  %v85_v11 = vld [vmem:[#allocation5 + $0xa8] sm:$0xff]  ;;  %v82_v12 = vld [vmem:[#allocation5 + $0x90] sm:$0xff]  ;;  %v83_v13 = vld [vmem:[#allocation5 + $0x98] sm:$0xff] }
  0x14   :  { %104 = vmatpush.msra.mxu0 %v90_v4  ;;  %2774 = vmatpush.msra.mxu2 %v90_v4  ;;  %v80_v14 = vld [vmem:[#allocation5 + $0x80] sm:$0xff]  ;;  %v81_v15 = vld [vmem:[#allocation5 + $0x88] sm:$0xff]  ;;  %v78_v16 = vld [vmem:[#allocation5 + $0x70] sm:$0xff]  ;;  %v2948_v4 = vmov 2131351028  }
  0x15   :  { %133 = vmatpush.msra.mxu1 %v91_v5  ;;  %2790 = vmatpush.msra.mxu3 %v91_v5  ;;  %v79_v17 = vld [vmem:[#allocation5 + $0x78] sm:$0xff]  ;;  %v76_v18 = vld [vmem:[#allocation5 + $0x60] sm:$0xff]  ;;  %v77_v19 = vld [vmem:[#allocation5 + $0x68] sm:$0xff] }
  0x16   :  { %105 = vmatpush.msra.mxu0 %v88_v6  ;;  %2775 = vmatpush.msra.mxu2 %v88_v6  ;;  %v74_v20 = vld [vmem:[#allocation5 + $0x50] sm:$0xff]  ;;  %v75_v21 = vld [vmem:[#allocation5 + $0x58] sm:$0xff]  ;;  %v72_v22 = vld [vmem:[#allocation5 + $0x40] sm:$0xff]  ;;  %v2949_v6 = vmov 2102212464  }
  0x17   :  { %134 = vmatpush.msra.mxu1 %v89_v7  ;;  %2791 = vmatpush.msra.mxu3 %v89_v7  ;;  %v73_v23 = vld [vmem:[#allocation5 + $0x48] sm:$0xff]  ;;  %v70_v24 = vld [vmem:[#allocation5 + $0x30] sm:$0xff]  ;;  %v71_v25 = vld [vmem:[#allocation5 + $0x38] sm:$0xff] }
  0x18   :  { %106 = vmatpush.msra.mxu0 %v86_v8  ;;  %2776 = vmatpush.msra.mxu2 %v86_v8  ;;  %v68_v26 = vld [vmem:[#allocation5 + $0x20] sm:$0xff]  ;;  %v69_v27 = vld [vmem:[#allocation5 + $0x28] sm:$0xff]  ;;  %v66_v28 = vld [vmem:[#allocation5 + $0x10] sm:$0xff]  ;;  %v2950_v8 = vmov 920167782  }
  0x19   :  { %135 = vmatpush.msra.mxu1 %v87_v9  ;;  %2792 = vmatpush.msra.mxu3 %v87_v9  ;;  %v67_v29 = vld [vmem:[#allocation5 + $0x18] sm:$0xff]  ;;  %v64_v30 = vld [vmem:[#allocation5] sm:$0xff]  ;;  %v65_v31 = vld [vmem:[#allocation5 + $0x8] sm:$0xff] }
  0x1a   :  { %107 = vmatpush.msra.mxu0 %v84_v10  ;;  %2777 = vmatpush.msra.mxu2 %v84_v10  ;;  %v60_v32 = vld [vmem:[#allocation2] sm:$0xff]  ;;  %v62_v33 = vld [vmem:[#allocation2 + $0x10] sm:$0xff]  ;;  %v61_v34 = vld [vmem:[#allocation2 + $0x8] sm:$0xff] }
  0x1b   :  { %136 = vmatpush.msra.mxu1 %v85_v11  ;;  %2793 = vmatpush.msra.mxu3 %v85_v11  ;;  %v63_v35 = vld [vmem:[#allocation2 + $0x18] sm:$0xff]  ;;  %v96_v36 = vld [vmem:[#allocation7] sm:$0x3] }
  0x1c   :  { %108 = vmatpush.msra.mxu0 %v82_v12  ;;  %2778 = vmatpush.msra.mxu2 %v82_v12  ;;  %v2985_v37 = vperm.slane %v96_v36, 0  ;;  %v2987_v38 = vperm.slane %v96_v36, 1 }
  0x1d   :  { %137 = vmatpush.msra.mxu1 %v83_v13  ;;  %2794 = vmatpush.msra.mxu3 %v83_v13 }
  0x1e   :  { %109 = vmatpush.msra.mxu0 %v80_v14  ;;  %2779 = vmatpush.msra.mxu2 %v80_v14 }
  0x1f   :  { %138 = vmatpush.msra.mxu1 %v81_v15  ;;  %2795 = vmatpush.msra.mxu3 %v81_v15 }
  0x20   :  { %110 = vmatpush.msra.mxu0 %v78_v16  ;;  %2780 = vmatpush.msra.mxu2 %v78_v16 }
  0x21   :  { %139 = vmatpush.msra.mxu1 %v79_v17  ;;  %2796 = vmatpush.msra.mxu3 %v79_v17  ;;  %v2951_v17 = vmov 1326507024  }
  0x22   :  { %111 = vmatpush.msra.mxu0 %v76_v18  ;;  %2781 = vmatpush.msra.mxu2 %v76_v18 }
  0x23   :  { %140 = vmatpush.msra.mxu1 %v77_v19  ;;  %2797 = vmatpush.msra.mxu3 %v77_v19 }
  0x24   :  { %112 = vmatpush.msra.mxu0 %v74_v20  ;;  %2782 = vmatpush.msra.mxu2 %v74_v20 }
  0x25   :  { %141 = vmatpush.msra.mxu1 %v75_v21  ;;  %2798 = vmatpush.msra.mxu3 %v75_v21 }
  0x26   :  { %113 = vmatpush.msra.mxu0 %v72_v22  ;;  %2783 = vmatpush.msra.mxu2 %v72_v22 }
  0x27   :  { %142 = vmatpush.msra.mxu1 %v73_v23  ;;  %2799 = vmatpush.msra.mxu3 %v73_v23 }
  0x28   :  { %114 = vmatpush.msra.mxu0 %v70_v24  ;;  %2784 = vmatpush.msra.mxu2 %v70_v24 }
  0x29   :  { %143 = vmatpush.msra.mxu1 %v71_v25  ;;  %2800 = vmatpush.msra.mxu3 %v71_v25 }
  0x2a   :  { %115 = vmatpush.msra.mxu0 %v68_v26  ;;  %2785 = vmatpush.msra.mxu2 %v68_v26 }
  0x2b   :  { %144 = vmatpush.msra.mxu1 %v69_v27  ;;  %2801 = vmatpush.msra.mxu3 %v69_v27 }
  0x2c   :  { %116 = vmatpush.msra.mxu0 %v66_v28  ;;  %2786 = vmatpush.msra.mxu2 %v66_v28 }
  0x2d   :  { %145 = vmatpush.msra.mxu1 %v67_v29  ;;  %2802 = vmatpush.msra.mxu3 %v67_v29 }
  0x2e   :  { %117 = vmatpush.msra.mxu0 %v64_v30  ;;  %2787 = vmatpush.msra.mxu2 %v64_v30 }
  0x2f   :  { %146 = vmatpush.msra.mxu1 %v65_v31  ;;  %2803 = vmatpush.msra.mxu3 %v65_v31 }
  0x30   :  { %118 = vmatmul.f32.vlgmr.msra.gmra.mxu0 %v60_v32  ;;  %124 = vmatmul.f32.vlgmr.msra.gmra.mxu2 %v62_v33 }
  0x31   :  { %147 = vmatmul.f32.vlgmr.msra.gmra.mxu1 %v60_v32  ;;  %153 = vmatmul.f32.vlgmr.msra.gmra.mxu3 %v62_v33 }
  0x38   :  { %121 = vmatmul.f32.gmra.mxu0 %v61_v34  ;;  %127 = vmatmul.f32.gmra.mxu2 %v63_v35 }
  0x39   :  { %150 = vmatmul.f32.gmra.mxu1 %v61_v34  ;;  %156 = vmatmul.f32.gmra.mxu3 %v63_v35 }
  0xad   :  { %v119_v39 = vpop.f32.mrf.mxu0 }
  0xae   :  { %v2990_v40 = vadd.f32 %v119_v39, %v2985_v37  ;;  %v148_v41 = vpop.f32.mrf.mxu1 }
  0xaf   :  { %v2993_v42 = vadd.f32 %v148_v41, %v2987_v38 }
  0xb0   :  { %v2996_v43 = vmul.f32 10.0, %v2990_v40 }
  0xb1   :  { %v2999_v44 = vmul.f32 10.0, %v2993_v42 }
  0xb2   :  { %v203_v45 = vand.u32 2139095040, %v2996_v43  ;;  %v200_v46 = vand.u32 2147483647, %v2996_v43 }
  0xb3   :  { %v357_v48 = vand.u32 2139095040, %v2999_v44  ;;  %v354_v52 = vand.u32 2147483647, %v2999_v44  ;;  %v125_v56 = vpop.f32.mrf.mxu2 }
  0xb4   :  { %v204_v47 = vshrl.u32 %v203_v45, 23  ;;  %v207_v51 = vand.u32 8388607, %v200_v46  ;;  %v3012_v62 = vadd.f32 %v125_v56, %v2985_v37 }
  0xb5   :  { %v358_v50 = vshrl.u32 %v357_v48, 23  ;;  %v361_v59 = vand.u32 8388607, %v354_v52 }
  0xb6   :  { %v2724_v49 = vadd.s32 4294967169, %v204_v47  ;;  %v208_v57 = vor.u32 8388608, %v207_v51  ;;  %v3029_v19 = vmul.f32 10.0, %v3012_v62 }
  0xb7   :  { %v2727_v54 = vadd.s32 4294967169, %v358_v50  ;;  %v362_v11 = vor.u32 8388608, %v361_v59 }
  0xb8   :  { %v210_v53 = vadd.s32 1, %v2724_v49  ;;  %v3019_v10 = vshll.u32 %v208_v57, 8 }
  0xb9   :  { %v364_v55 = vadd.s32 1, %v2727_v54  ;;  %v3040_v29 = vshll.u32 %v362_v11, 8 }
  0xba   :  { %vm211_vm0 = vcmp.gt.s32.totalorder %v210_v53, 0  ;;  %v249_v28 = vand.u32 65535, %v3019_v10  ;;  %v250_v45 = vshrl.u32 %v3019_v10, 16 }
  0xbb   :  { %v212_v58 = vsel %vm211_vm0, %v210_v53, 0  ;;  %vm365_vm1 = vcmp.gt.s32.totalorder %v364_v55, 0 }
  0xbc   :  { %v214_v60 = vand.u32 31, %v212_v58  ;;  %v3009_v61 = vshrl.u32 %v212_v58, 5  ;;  %v366_v15 = vsel %vm365_vm1, %v364_v55, 0 }
  0xbd   :  { %v3033_v25 = vand.u32 31, %v366_v15  ;;  %v3056_v47 = vshrl.u32 %v366_v15, 5 }
  0xbe   :  { %v215_v63 = vsub.s32 32, %v214_v60  ;;  %v217_v1 = vshll.u32 %v2946_v0, %v214_v60  ;;  %v220_v3 = vshll.u32 %v2947_v2, %v214_v60  ;;  %v223_v5 = vshll.u32 %v2948_v4, %v214_v60 }
  0xbf   :  { %v226_v7 = vshll.u32 %v2949_v6, %v214_v60  ;;  %v229_v9 = vshll.u32 %v2950_v8, %v214_v60  ;;  %vm232_vm2 = vcmp.lt.s32.totalorder %v3009_v61, 1  ;;  %vm235_vm3 = vcmp.lt.s32.totalorder %v3009_v61, 4 }
  0xc0   :  { %v218_v12 = vshrl.u32 %v2947_v2, %v215_v63  ;;  %v221_v13 = vshrl.u32 %v2948_v4, %v215_v63  ;;  %v224_v14 = vshrl.u32 %v2949_v6, %v215_v63  ;;  %v227_v16 = vshrl.u32 %v2950_v8, %v215_v63 }
  0xc1   :  { %v230_v18 = vshrl.u32 %v2951_v17, %v215_v63  ;;  %vm234_vm4 = vcmp.lt.s32.totalorder %v3009_v61, 3  ;;  %v216_v30 = vshrl.u32 %v2946_v0, %v215_v63  ;;  %v3044_v33 = vsub.s32 32, %v3033_v25 }
  0xc2   :  { %v219_v20 = vor.u32 %v218_v12, %v217_v1  ;;  %v222_v21 = vor.u32 %v221_v13, %v220_v3  ;;  %v225_v22 = vor.u32 %v224_v14, %v223_v5  ;;  %v228_v23 = vor.u32 %v227_v16, %v226_v7 }
  0xc3   :  { %v231_v24 = vor.u32 %v230_v18, %v229_v9  ;;  %vm233_vm5 = vcmp.lt.s32.totalorder %v3009_v61, 2  ;;  %v371_v55 = vshll.u32 %v2946_v0, %v3033_v25  ;;  %v372_v56 = vshrl.u32 %v2947_v2, %v3044_v33 }
  0xc4   :  { %v240_v26 = vsel %vm232_vm2, %v219_v20, %v222_v21  ;;  %v244_v27 = vsel %vm232_vm2, %v222_v21, %v225_v22  ;;  %v241_v31 = vsel %vm235_vm3, %v228_v23, 920167782  ;;  %v237_v34 = vsel %vm235_vm3, %v225_v22, 2102212464 }
  0xc5   :  { %v245_v32 = vsel %vm235_vm3, %v231_v24, 1326507024  ;;  %v242_v35 = vsel %vm234_vm4, %v225_v22, %v241_v31  ;;  %v236_v53 = vsel %vm232_vm2, %v216_v30, %v219_v20  ;;  %v238_v54 = vsel %vm234_vm4, %v222_v21, %v237_v34 }
  0xc6   :  { %v246_v36 = vsel %vm234_vm4, %v228_v23, %v245_v32  ;;  %v243_v39 = vsel %vm233_vm5, %v240_v26, %v242_v35  ;;  %v374_v59 = vshll.u32 %v2947_v2, %v3033_v25  ;;  %v375_v60 = vshrl.u32 %v2948_v4, %v3044_v33 }
  0xc7   :  { %v247_v41 = vsel %vm233_vm5, %v244_v27, %v246_v36  ;;  %v273_v50 = vand.u32 65535, %v243_v39  ;;  %v274_v51 = vshrl.u32 %v243_v39, 16  ;;  %v377_v5 = vshll.u32 %v2948_v4, %v3033_v25 }
  0xc8   :  { %v251_v48 = vand.u32 65535, %v247_v41  ;;  %v252_v49 = vshrl.u32 %v247_v41, 16  ;;  %v3072_v21 = vor.u32 %v372_v56, %v371_v55  ;;  %v2952_v22 = vmov 0  }
  0xc9   :  { %v276_v1 = vmul.u32 %v274_v51, %v249_v28  ;;  %v277_v3 = vmul.u32 %v273_v50, %v250_v45  ;;  %v275_v11 = vmul.u32 %v273_v50, %v249_v28  ;;  %v278_v12 = vmul.u32 %v274_v51, %v250_v45 }
  0xca   :  { %v254_v57 = vmul.u32 %v252_v49, %v249_v28  ;;  %v255_v58 = vmul.u32 %v251_v48, %v250_v45  ;;  %v253_v63 = vmul.u32 %v251_v48, %v249_v28  ;;  %v256_v7 = vmul.u32 %v252_v49, %v250_v45 }
  0xcb   :  { %v279_v15 = vshll.u32 %v276_v1, 16  ;;  %v280_v16 = vshrl.u32 %v276_v1, 16  ;;  %v281_v20 = vshll.u32 %v277_v3, 16  ;;  %v378_v26 = vshrl.u32 %v2949_v6, %v3044_v33 }
  0xcc   :  { %v257_v9 = vshll.u32 %v254_v57, 16  ;;  %v258_v13 = vshrl.u32 %v254_v57, 16  ;;  %v259_v14 = vshll.u32 %v255_v58, 16  ;;  %v380_v30 = vshll.u32 %v2949_v6, %v3033_v25 }
  0xcd   :  { %vm283_vm7 = vc.u32 %v275_v11, %v279_v15  ;;  %v285_v24 = vadd.s32 %v279_v15, %v275_v11  ;;  %v3081_v34 = vor.u32 %v375_v60, %v374_v59  ;;  %v3084_v39 = vor.u32 %v378_v26, %v377_v5 }
  0xce   :  { %vm261_vm6 = vc.u32 %v253_v63, %v257_v9  ;;  %v263_v18 = vadd.s32 %v257_v9, %v253_v63  ;;  %v284_v28 = vsel %vm283_vm7, 1, %v2952_v22  ;;  %v381_v41 = vshrl.u32 %v2950_v8, %v3044_v33 }
  0xcf   :  { %v262_v23 = vsel %vm261_vm6, 1, %v2952_v22  ;;  %v286_v32 = vadd.s32 %v284_v28, %v278_v12  ;;  %vm287_vm9 = vc.u32 %v285_v24, %v281_v20  ;;  %v383_v48 = vshll.u32 %v2950_v8, %v3033_v25 }
  0xd0   :  { %v264_v27 = vadd.s32 %v262_v23, %v256_v7  ;;  %vm265_vm8 = vc.u32 %v263_v18, %v259_v14  ;;  %v288_v36 = vsel %vm287_vm9, 1, %v2952_v22  ;;  %v384_v49 = vshrl.u32 %v2951_v17, %v3044_v33 }
  0xd1   :  { %v266_v31 = vsel %vm265_vm8, 1, %v2952_v22  ;;  %v290_v45 = vadd.s32 %v288_v36, %v286_v32  ;;  %vm386_vm10 = vcmp.lt.s32.totalorder %v3056_v47, 1  ;;  %v260_v50 = vshrl.u32 %v255_v58, 16 }
  0xd2   :  { %v268_v35 = vadd.s32 %v266_v31, %v264_v27  ;;  %v382_v55 = vor.u32 %v381_v41, %v380_v30  ;;  %vm388_vm11 = vcmp.lt.s32.totalorder %v3056_v47, 3  ;;  %v282_v56 = vshrl.u32 %v277_v3, 16 }
  0xd3   :  { %v291_v57 = vadd.s32 %v290_v45, %v280_v16  ;;  %v385_v59 = vor.u32 %v384_v49, %v383_v48  ;;  %vm389_vm12 = vcmp.lt.s32.totalorder %v3056_v47, 4  ;;  %v3097_v63 = vadd.s32 %v285_v24, %v281_v20 }
  0xd4   :  { %v269_v51 = vadd.s32 %v268_v35, %v258_v13  ;;  %v394_v25 = vsel %vm386_vm10, %v3072_v21, %v3081_v34  ;;  %v395_v58 = vsel %vm389_vm12, %v382_v55, 920167782  ;;  %v239_v1 = vsel %vm233_vm5, %v236_v53, %v238_v54 }
  0xd5   :  { %v292_v3 = vadd.s32 %v291_v57, %v282_v56  ;;  %vm387_vm13 = vcmp.lt.s32.totalorder %v3056_v47, 2  ;;  %v396_v5 = vsel %vm388_vm11, %v3084_v39, %v395_v58  ;;  %v398_v9 = vsel %vm386_vm10, %v3081_v34, %v3084_v39 }
  0xd6   :  { %v3095_v60 = vadd.s32 %v269_v51, %v260_v50  ;;  %v397_v7 = vsel %vm387_vm13, %v394_v25, %v396_v5  ;;  %v403_v61 = vand.u32 65535, %v3040_v29  ;;  %v399_v54 = vsel %vm389_vm12, %v385_v59, 1326507024 }
  0xd7   :  { %v296_v53 = vadd.s32 1, %v292_v3  ;;  %v427_v11 = vand.u32 65535, %v397_v7  ;;  %v428_v12 = vshrl.u32 %v397_v7, 16  ;;  %v293_v13 = vmul.u32 %v3019_v10, %v239_v1 }
  0xd8   :  { %vm295_vm14 = vc.u32 %v3095_v60, %v3097_v63  ;;  %v400_v14 = vsel %vm388_vm11, %v382_v55, %v399_v54  ;;  %v404_v18 = vshrl.u32 %v3040_v29, 16  ;;  %v819_v31 = vand.u32 2139095040, %v3029_v19 }
  0xd9   :  { %v297_v15 = vsel %vm295_vm14, %v296_v53, %v292_v3  ;;  %v401_v16 = vsel %vm387_vm13, %v398_v9, %v400_v14  ;;  %v430_v20 = vmul.u32 %v428_v12, %v403_v61  ;;  %v429_v27 = vmul.u32 %v427_v11, %v403_v61 }
  0xda   :  { %v298_v23 = vadd.s32 %v297_v15, %v293_v13  ;;  %v405_v24 = vand.u32 65535, %v401_v16  ;;  %v406_v26 = vshrl.u32 %v401_v16, 16  ;;  %v431_v28 = vmul.u32 %v427_v11, %v404_v18 }
  0xdb   :  { %v433_v30 = vshll.u32 %v430_v20, 16  ;;  %v432_v36 = vmul.u32 %v428_v12, %v404_v18  ;;  %v820_v56 = vshrl.u32 %v819_v31, 23  ;;  %v370_v5 = vshrl.u32 %v2946_v0, %v3044_v33 }
  0xdc   :  { %v299_v32 = vadd.s32 536870912, %v298_v23  ;;  %v408_v10 = vmul.u32 %v406_v26, %v403_v61  ;;  %v409_v35 = vmul.u32 %v405_v24, %v404_v18  ;;  %v407_v45 = vmul.u32 %v405_v24, %v403_v61 }
  0xdd   :  { %vm437_vm15 = vc.u32 %v429_v27, %v433_v30  ;;  %v410_v48 = vmul.u32 %v406_v26, %v404_v18  ;;  %v435_v50 = vshll.u32 %v431_v28, 16  ;;  %v439_v55 = vadd.s32 %v433_v30, %v429_v27 }
  0xde   :  { %v300_v41 = vshrl.u32 %v299_v32, 30  ;;  %v411_v49 = vshll.u32 %v408_v10, 16  ;;  %v438_v51 = vsel %vm437_vm15, 1, %v2952_v22  ;;  %v413_v59 = vshll.u32 %v409_v35, 16 }
  0xdf   :  { %v440_v1 = vadd.s32 %v438_v51, %v432_v36  ;;  %vm441_vm1 = vc.u32 %v439_v55, %v435_v50  ;;  %v391_v9 = vsel %vm389_vm12, %v3084_v39, 2102212464  ;;  %v2736_v54 = vadd.s32 4294967169, %v820_v56 }
  0xe0   :  { %v301_v57 = vshll.u32 %v300_v41, 30  ;;  %vm415_vm0 = vc.u32 %v407_v45, %v411_v49  ;;  %v417_v25 = vadd.s32 %v411_v49, %v407_v45  ;;  %v442_v53 = vsel %vm441_vm1, 1, %v2952_v22 }
  0xe1   :  { %v416_v58 = vsel %vm415_vm0, 1, %v2952_v22  ;;  %v168_v11 = vmul.f32 %v2990_v40, %v2990_v40  ;;  %v434_v13 = vshrl.u32 %v430_v20, 16  ;;  %v412_v14 = vshrl.u32 %v408_v10, 16 }
  0xe2   :  { %v302_v3 = vsub.s32 %v298_v23, %v301_v57  ;;  %v418_v7 = vadd.s32 %v416_v58, %v410_v48  ;;  %vm419_vm2 = vc.u32 %v417_v25, %v413_v59  ;;  %v444_v33 = vadd.s32 %v442_v53, %v440_v1 }
  0xe3   :  { %v420_v61 = vsel %vm419_vm2, 1, %v2952_v22  ;;  %v826_v16 = vadd.s32 1, %v2736_v54  ;;  %v390_v39 = vsel %vm386_vm10, %v370_v5, %v3072_v21  ;;  %v392_v23 = vsel %vm388_vm11, %v3081_v34, %v391_v9 }
  0xe4   :  { %vm303_vm3 = vcmp.lt.s32.totalorder %v302_v3, 0  ;;  %v304_v12 = vsub.s32 0, %v302_v3  ;;  %v422_v15 = vadd.s32 %v420_v61, %v418_v7  ;;  %v445_v27 = vadd.s32 %v444_v33, %v434_v13 }
  0xe5   :  { %v414_v40 = vshrl.u32 %v409_v35, 16  ;;  %v436_v30 = vshrl.u32 %v431_v28, 16  ;;  %vm827_vm4 = vcmp.gt.s32.totalorder %v826_v16, 0  ;;  %v176_v20 = vmul.f32 -1600.0, %v168_v11 }
  0xe6   :  { %v305_v18 = vsel %vm303_vm3, %v304_v12, %v302_v3  ;;  %v423_v26 = vadd.s32 %v422_v15, %v412_v14  ;;  %v324_v32 = vsub.s32 4, %v300_v41  ;;  %v393_v10 = vsel %vm387_vm13, %v390_v39, %v392_v23 }
  0xe7   :  { %v306_v24 = vclz %v305_v18  ;;  %v3150_v45 = vadd.s32 %v439_v55, %v435_v50  ;;  %v446_v21 = vadd.s32 %v445_v27, %v436_v30  ;;  %v828_v48 = vsel %vm827_vm4, %v826_v16, 0  ;;  %v154_v27 = vpop.f32.mrf.mxu3 }
  0xe8   :  { %v3148_v36 = vadd.s32 %v423_v26, %v414_v40  ;;  %vm202_vm5 = vcmp.lt.s32.totalorder %v2996_v43, 0  ;;  %v294_v34 = vadd.s32 %v3097_v63, %v3095_v60  ;;  %v830_v28 = vand.u32 31, %v828_v48 }
  0xe9   :  { %v2725_v31 = vadd.s32 4294967294, %v306_v24  ;;  %v447_v49 = vmul.u32 %v3040_v29, %v393_v10  ;;  %v450_v47 = vadd.s32 1, %v446_v21  ;;  %v325_v50 = vsel %vm202_vm5, %v324_v32, %v300_v41 }
  0xea   :  { %vm449_vm7 = vc.u32 %v3148_v36, %v3150_v45  ;;  %v3160_v55 = vsub.s32 32, %v830_v28  ;;  %vm3164_vm8 = vcmp.le.f32.partialorder %v200_v46, 0.7853982  ;;  %v816_v29 = vand.u32 2147483647, %v3029_v19 }
  0xeb   :  { %vm2726_vm6 = vcmp.lt.s32.totalorder %v2725_v31, 0  ;;  %v451_v63 = vsel %vm449_vm7, %v450_v47, %v446_v21  ;;  %v184_v1 = vmul.f32 1.442695, %v176_v20  ;;  %v327_v5 = vsel %vm3164_vm8, 0, %v325_v50 }
  0xec   :  { %v309_v35 = vsel %vm2726_vm6, 0, %v2725_v31  ;;  %v452_v58 = vadd.s32 %v451_v63, %v447_v49  ;;  %v3173_v41 = vmul.f32 %v2993_v42, %v2993_v42  ;;  %v843_v61 = vshrl.u32 %v2950_v8, %v3160_v55 }
  0xed   :  { %v310_v51 = vsub.s32 32, %v309_v35  ;;  %v314_v56 = vsub.s32 4294967266, %v309_v35  ;;  %v311_v57 = vshll.u32 %v302_v3, %v309_v35  ;;  %v823_v3 = vand.u32 8388607, %v816_v29 }
  0xee   :  { %v453_v9 = vadd.s32 536870912, %v452_v58  ;;  %v3179_v53 = vshrl.u32 %v828_v48, 5  ;;  %v833_v54 = vshll.u32 %v2946_v0, %v830_v28  ;;  %v834_v11 = vshrl.u32 %v2947_v2, %v3160_v55 }
  0xef   :  { %v312_v59 = vshrl.u32 %v294_v34, %v310_v51  ;;  %v315_v25 = vadd.s32 127, %v314_v56  ;;  %v837_v42 = vshrl.u32 %v2948_v4, %v3160_v55  ;;  %v842_v14 = vshll.u32 %v2949_v6, %v830_v28 }
  0xf0   :  { %v3184_v13 = vshrl.u32 %v453_v9, 30  ;;  %v836_v15 = vshll.u32 %v2947_v2, %v830_v28  ;;  %v840_v33 = vshrl.u32 %v2949_v6, %v3160_v55  ;;  %v845_v16 = vshll.u32 %v2950_v8, %v830_v28 }
  0xf1   :  { %v313_v7 = vor.u32 %v312_v59, %v311_v57  ;;  %v316_v46 = vshll.u32 %v315_v25, 23  ;;  %v846_v18 = vshrl.u32 %v2951_v17, %v3160_v55  ;;  %v844_v26 = vor.u32 %v843_v61, %v842_v14 }
  0xf2   :  { %v455_v24 = vshll.u32 %v3184_v13, 30  ;;  %2821 = vpow2.f32 %v184_v1  ;;  %v824_v40 = vor.u32 8388608, %v823_v3  ;;  %v839_v30 = vshll.u32 %v2948_v4, %v830_v28 }
  0xf3   :  { %v317_v12 = vor.u32 4788187, %v316_v46  ;;  %v320_v23 = vcvt.s32.f32 %v313_v7  ;;  %v847_v20 = vor.u32 %v846_v18, %v845_v16  ;;  %v3199_v10 = vor.u32 %v834_v11, %v833_v54 }
  0xf4   :  { %v3197_v32 = vsub.s32 %v452_v58, %v455_v24  ;;  %v3201_v21 = vor.u32 %v837_v42, %v836_v15  ;;  %v1584_v48 = vadd.s32 3, %v327_v5  ;;  %v3203_v34 = vor.u32 %v840_v33, %v839_v30 }
  0xf5   :  { %v318_v39 = vand.u32 2147483647, %v317_v12  ;;  %vm851_vm9 = vcmp.lt.s32.totalorder %v3179_v53, 4  ;;  %v3207_v35 = vadd.f32 %v154_v27, %v2987_v38  ;;  %v3213_v51 = vand.u32 3, %v327_v5 }
  0xf6   :  { %vm457_vm10 = vcmp.lt.s32.totalorder %v3197_v32, 0  ;;  %v458_v28 = vsub.s32 0, %v3197_v32  ;;  %v857_v47 = vsel %vm851_vm9, %v844_v26, 920167782  ;;  %vm848_vm11 = vcmp.lt.s32.totalorder %v3179_v53, 1 }
  0xf7   :  { %v321_v31 = vmul.f32 %v320_v23, %v318_v39  ;;  %v861_v56 = vsel %vm851_vm9, %v847_v20, 1326507024  ;;  %v3218_v50 = vshll.u32 %v824_v40, 8  ;;  %vm850_vm12 = vcmp.lt.s32.totalorder %v3179_v53, 3 }
  0xf8   :  { %v459_v57 = vsel %vm457_vm10, %v458_v28, %v3197_v32  ;;  %v856_v59 = vsel %vm848_vm11, %v3199_v10, %v3201_v21  ;;  %v3228_v25 = vpop.eup %2821  ;;  %v858_v5 = vsel %vm850_vm12, %v3203_v34, %v857_v47  ;;  %v860_v7 = vsel %vm848_vm11, %v3201_v21, %v3203_v34 }
  0xf9   :  { %v322_v49 = vxor.u32 2147483648, %v321_v31  ;;  %v460_v1 = vclz %v459_v57  ;;  %v3244_v9 = vand.u32 3, %v1584_v48  ;;  %v862_v60 = vsel %vm850_vm12, %v844_v26, %v861_v56 }
  0xfa   :  { %v3249_v61 = vmul.f32 10.0, %v3207_v35  ;;  %v448_v3 = vadd.s32 %v3150_v45, %v3148_v36  ;;  %v3255_v11 = vshrl.u32 %v2946_v0, %v3160_v55  ;;  %vm849_vm13 = vcmp.lt.s32.totalorder %v3179_v53, 2 }
  0xfb   :  { %v323_v63 = vsel %vm202_vm5, %v322_v49, %v321_v31  ;;  %v2728_v54 = vadd.s32 4294967294, %v460_v1  ;;  %v3260_v14 = vsel %vm849_vm13, %v856_v59, %v858_v5  ;;  %v863_v15 = vsel %vm849_vm13, %v860_v7, %v862_v60 }
  0xfc   :  { %v3233_v58 = vsel %vm3164_vm8, %v2996_v43, %v323_v63  ;;  %v865_v33 = vand.u32 65535, %v3218_v50  ;;  %v867_v36 = vand.u32 65535, %v863_v15  ;;  %v868_v45 = vshrl.u32 %v863_v15, 16 }
  0xfd   :  { %v328_v46 = vmul.f32 %v3233_v58, %v3233_v58  ;;  %vm2729_vm14 = vcmp.lt.s32.totalorder %v2728_v54, 0  ;;  %v866_v39 = vshrl.u32 %v3218_v50, 16  ;;  %v889_v26 = vand.u32 65535, %v3260_v14 }
  0xfe   :  { %v463_v55 = vsel %vm2729_vm14, 0, %v2728_v54  ;;  %v890_v27 = vshrl.u32 %v3260_v14, 16  ;;  %v870_v20 = vmul.u32 %v868_v45, %v865_v33  ;;  %vm349_vm15 = vcmp.eq.s32.totalorder %v3213_v51, 2 }
  0xff   :  { %v329_v12 = vmul.f32 -0.001358992, %v328_v46  ;;  %v336_v42 = vmul.f32 -0.00019511016, %v328_v46  ;;  %v464_v23 = vsub.s32 32, %v463_v55  ;;  %v468_v24 = vsub.s32 4294967266, %v463_v55 }
 0x100   :  { %v3268_v31 = vmul.u32 %v867_v36, %v866_v39  ;;  %v465_v48 = vshll.u32 %v3197_v32, %v463_v55  ;;  %v869_v47 = vmul.u32 %v867_v36, %v865_v33  ;;  %vm1590_vm0 = vcmp.eq.s32.totalorder %v3244_v9, 2 }
 0x101   :  { %v330_v16 = vadd.f32 0.041655596, %v329_v12  ;;  %v337_v18 = vadd.f32 0.008332121, %v336_v42  ;;  %v466_v49 = vshrl.u32 %v448_v3, %v464_v23  ;;  %v469_v28 = vadd.s32 127, %v468_v24 }
 0x102   :  { %v872_v57 = vmul.u32 %v868_v45, %v866_v39  ;;  %v873_v59 = vshll.u32 %v870_v20, 16  ;;  %vm346_vm1 = vcmp.eq.s32.totalorder %v3213_v51, 0  ;;  %vm1587_vm2 = vcmp.eq.s32.totalorder %v3244_v9, 0 }
 0x103   :  { %v331_v40 = vmul.f32 %v330_v16, %v328_v46  ;;  %v338_v30 = vmul.f32 %v337_v18, %v328_v46  ;;  %v467_v1 = vor.u32 %v466_v49, %v465_v48  ;;  %v470_v5 = vshll.u32 %v469_v28, 23 }
 0x104   :  { %v875_v7 = vshll.u32 %v3268_v31, 16  ;;  %v3276_v60 = vmul.u32 %v890_v27, %v865_v33  ;;  %vm345_vm3 = vcmp.lt.s32.totalorder %v3213_v51, 2  ;;  %vm1586_vm4 = vcmp.lt.s32.totalorder %v3244_v9, 2 }
 0x105   :  { %v332_v56 = vadd.f32 -0.4999988, %v331_v40  ;;  %v339_v63 = vadd.f32 -0.16666654, %v338_v30  ;;  %vm356_vm5 = vcmp.lt.s32.totalorder %v2999_v44, 0  ;;  %vm877_vm6 = vc.u32 %v869_v47, %v873_v59 }
 0x106   :  { %v879_v54 = vadd.s32 %v873_v59, %v869_v47  ;;  %vm343_vm7 = vweird.f32 %v2996_v43  ;;  %vm3284_vm8 = vcmp.le.f32.partialorder %v354_v52, 0.7853982  ;;  %v471_v42 = vor.u32 4788187, %v470_v5 }
 0x107   :  { %v333_v32 = vmul.f32 %v332_v56, %v328_v46  ;;  %v340_v3 = vmul.f32 %v339_v63, %v328_v46  ;;  %v878_v14 = vsel %vm877_vm6, 1, %v2952_v22  ;;  %v891_v46 = vmul.u32 %v889_v26, %v865_v33 }
 0x108   :  { %v893_v15 = vmul.u32 %v889_v26, %v866_v39  ;;  %v880_v16 = vadd.s32 %v878_v14, %v872_v57  ;;  %vm881_vm10 = vc.u32 %v879_v54, %v875_v7  ;;  %v472_v18 = vand.u32 2147483647, %v471_v42 }
 0x109   :  { %v334_v36 = vadd.f32 1.0, %v333_v32  ;;  %v341_v45 = vadd.f32 1.0, %v340_v3  ;;  %v474_v55 = vcvt.s32.f32 %v467_v1  ;;  %v882_v23 = vsel %vm881_vm10, 1, %v2952_v22 }
 0x10a   :  { %v895_v24 = vshll.u32 %v3276_v60, 16  ;;  %v478_v30 = vsub.s32 4, %v3184_v13  ;;  %v884_v48 = vadd.s32 %v882_v23, %v880_v16  ;;  %v853_v33 = vsel %vm851_vm9, %v3203_v34, 2102212464 }
 0x10b   :  { %v342_v52 = vmul.f32 %v341_v45, %v3233_v58  ;;  %v350_v40 = vxor.u32 2147483648, %v334_v36  ;;  %v475_v49 = vmul.f32 %v474_v55, %v472_v18  ;;  %v874_v26 = vshrl.u32 %v870_v20, 16 }
 0x10c   :  { %vm899_vm14 = vc.u32 %v891_v46, %v895_v24  ;;  %v894_v56 = vmul.u32 %v890_v27, %v866_v39  ;;  %v897_v63 = vshll.u32 %v893_v15, 16  ;;  %v901_v1 = vadd.s32 %v895_v24, %v891_v46 }
 0x10d   :  { %v347_v28 = vxor.u32 2147483648, %v342_v52  ;;  %v351_v47 = vsel %vm349_vm15, %v350_v40, %v342_v52  ;;  %v1592_v58 = vsel %vm1590_vm0, %v350_v40, %v342_v52  ;;  %v476_v57 = vxor.u32 2147483648, %v475_v49 }
 0x10e   :  { %v900_v59 = vsel %vm899_vm14, 1, %v2952_v22  ;;  %v885_v20 = vadd.s32 %v884_v48, %v874_v26  ;;  %vm903_vm9 = vc.u32 %v901_v1, %v897_v63  ;;  %v479_v45 = vsel %vm356_vm5, %v478_v30, %v3184_v13 }
 0x10f   :  { %v348_v5 = vsel %vm346_vm1, %v334_v36, %v347_v28  ;;  %v1589_v34 = vsel %vm1587_vm2, %v334_v36, %v347_v28  ;;  %v902_v7 = vadd.s32 %v900_v59, %v894_v56  ;;  %v477_v27 = vsel %vm356_vm5, %v476_v57, %v475_v49 }
 0x110   :  { %v352_v32 = vsel %vm345_vm3, %v348_v5, %v351_v47  ;;  %v1593_v39 = vsel %vm1586_vm4, %v1589_v34, %v1592_v58  ;;  %v480_v42 = vsel %vm3284_vm8, %v2999_v44, %v477_v27  ;;  %v904_v51 = vsel %vm903_vm9, 1, %v2952_v22 }
 0x111   :  { %v353_v3 = vsel %vm343_vm7, nan, %v352_v32  ;;  %v1594_v54 = vsel %vm343_vm7, nan, %v1593_v39  ;;  %v482_v46 = vmul.f32 %v480_v42, %v480_v42  ;;  %v876_v36 = vshrl.u32 %v3268_v31, 16 }
 0x112   :  { %v1432_v14 = vmul.f32 %v3228_v25, %v353_v3  ;;  %v2680_v9 = vmul.f32 %v3228_v25, %v1594_v54  ;;  %v852_v43 = vsel %vm848_vm11, %v3255_v11, %v3199_v10  ;;  %v896_v16 = vshrl.u32 %v3276_v60, 16 }
 0x113   :  { %v906_v18 = vadd.s32 %v904_v51, %v902_v7  ;;  %v483_v55 = vmul.f32 -0.001358992, %v482_v46  ;;  %v490_v23 = vmul.f32 -0.00019511016, %v482_v46  ;;  %v854_v25 = vsel %vm850_vm12, %v3201_v21, %v853_v33 }
 0x114   :  { %2688 = vst [vmem:[#allocation8] sm:$0xff] %v1432_v14  ;;  %v3333_v31 = vadd.s32 %v885_v20, %v876_v36  ;;  %v172_v13 = vmul.f32 %v3012_v62, %v3012_v62  ;;  %v898_v24 = vshrl.u32 %v893_v15, 16  ;;  %v973_v10 = vand.u32 2139095040, %v3249_v61 }
 0x115   :  { %2696 = vst [vmem:[#allocation8 + $0x10] sm:$0xff] %v2680_v9  ;;  %v907_v52 = vadd.s32 %v906_v18, %v896_v16  ;;  %v481_v11 = vsel %vm3284_vm8, 0, %v479_v45  ;;  %v484_v60 = vadd.f32 0.041655596, %v483_v55  ;;  %v491_v40 = vadd.f32 0.008332121, %v490_v23  ;;  %v122_v16 = vpop.f32.mrf.mxu0 }
 0x116   :  { %v3340_v30 = vadd.s32 %v901_v1, %v897_v63  ;;  %v855_v21 = vsel %vm849_vm13, %v852_v43, %v854_v25  ;;  %v974_v49 = vshrl.u32 %v973_v10, 23  ;;  %v177_v33 = vmul.f32 -1600.0, %v3173_v41 }
 0x117   :  { %v908_v48 = vadd.s32 %v907_v52, %v898_v24  ;;  %v485_v26 = vmul.f32 %v484_v60, %v482_v46  ;;  %v492_v62 = vmul.f32 %v491_v40, %v482_v46  ;;  %v1739_v15 = vadd.s32 3, %v481_v11 }
 0x118   :  { %vm911_vm11 = vc.u32 %v3333_v31, %v3340_v30  ;;  %v180_v28 = vmul.f32 -1600.0, %v172_v13  ;;  %v2739_v47 = vadd.s32 4294967169, %v974_v49  ;;  %v909_v63 = vmul.u32 %v3218_v50, %v855_v21 }
 0x119   :  { %v912_v12 = vadd.s32 1, %v908_v48  ;;  %v486_v56 = vadd.f32 -0.4999988, %v485_v26  ;;  %v493_v58 = vadd.f32 -0.16666654, %v492_v62  ;;  %v498_v20 = vand.u32 3, %v481_v11 }
 0x11a   :  { %v970_v53 = vand.u32 2147483647, %v3249_v61  ;;  %v980_v59 = vadd.s32 1, %v2739_v47  ;;  %v186_v1 = vmul.f32 1.442695, %v177_v33  ;;  %v1740_v7 = vand.u32 3, %v1739_v15 }
 0x11b   :  { %v913_v57 = vsel %vm911_vm11, %v912_v12, %v908_v48  ;;  %v487_v5 = vmul.f32 %v486_v56, %v482_v46  ;;  %v494_v41 = vmul.f32 %v493_v58, %v482_v46  ;;  %v192_v32 = vmul.f32 1.442695, %v180_v28 }
 0x11c   :  { %v914_v34 = vadd.s32 %v913_v57, %v909_v63  ;;  %vm981_vm12 = vcmp.gt.s32.totalorder %v980_v59, 0  ;;  %vm497_vm13 = vweird.f32 %v2999_v44  ;;  %v977_v50 = vand.u32 8388607, %v970_v53 }
 0x11d   :  { %v488_v39 = vadd.f32 1.0, %v487_v5  ;;  %v495_v27 = vadd.f32 1.0, %v494_v41  ;;  %v982_v54 = vsel %vm981_vm12, %v980_v59, 0  ;;  %2823 = vpow2.f32 %v186_v1 }
 0x11e   :  { %v915_v3 = vadd.s32 536870912, %v914_v34  ;;  %v984_v51 = vand.u32 31, %v982_v54  ;;  %vm499_vm15 = vcmp.lt.s32.totalorder %v498_v20, 2  ;;  %vm500_vm0 = vcmp.eq.s32.totalorder %v498_v20, 0 }
 0x11f   :  { %v496_v14 = vmul.f32 %v495_v27, %v480_v42  ;;  %v504_v9 = vxor.u32 2147483648, %v488_v39  ;;  %2825 = vpow2.f32 %v192_v32  ;;  %vm503_vm1 = vcmp.eq.s32.totalorder %v498_v20, 2 }
 0x120   :  { %v3352_v36 = vshrl.u32 %v915_v3, 30  ;;  %v3354_v46 = vsub.s32 32, %v984_v51  ;;  %vm1741_vm2 = vcmp.lt.s32.totalorder %v1740_v7, 2  ;;  %vm1742_vm3 = vcmp.eq.s32.totalorder %v1740_v7, 0 }
 0x121   :  { %v501_v45 = vxor.u32 2147483648, %v496_v14  ;;  %v505_v18 = vsel %vm503_vm1, %v504_v9, %v496_v14  ;;  %vm1745_vm4 = vcmp.eq.s32.totalorder %v1740_v7, 2  ;;  %v978_v55 = vor.u32 8388608, %v977_v50 }
 0x122   :  { %v917_v43 = vshll.u32 %v3352_v36, 30  ;;  %v1747_v25 = vsel %vm1745_vm4, %v504_v9, %v496_v14  ;;  %v988_v10 = vshrl.u32 %v2947_v2, %v3354_v46  ;;  %v3363_v11 = vadd.f32 %v122_v16, %v2985_v37 }
 0x123   :  { %v502_v23 = vsel %vm500_vm0, %v488_v39, %v501_v45  ;;  %v1744_v42 = vsel %vm1742_vm3, %v488_v39, %v501_v45  ;;  %v2824_v60 = vpop.eup %2823  ;;  %v910_v62 = vadd.s32 %v3340_v30, %v3333_v31  ;;  %v991_v15 = vshrl.u32 %v2948_v4, %v3354_v46 }
 0x124   :  { %v3357_v13 = vsub.s32 %v914_v34, %v917_v43  ;;  %v506_v24 = vsel %vm499_vm15, %v502_v23, %v505_v18  ;;  %v1748_v52 = vsel %vm1741_vm2, %v1744_v42, %v1747_v25  ;;  %v987_v12 = vshll.u32 %v2946_v0, %v984_v51 }
 0x125   :  { %v507_v40 = vsel %vm497_vm13, nan, %v506_v24  ;;  %v1749_v21 = vsel %vm497_vm13, nan, %v1748_v52  ;;  %v3371_v49 = vpop.eup %2825  ;;  %v994_v44 = vshrl.u32 %v2949_v6, %v3354_v46  ;;  %v3381_v47 = vshll.u32 %v978_v55, 8 }
 0x126   :  { %vm919_vm5 = vcmp.lt.s32.totalorder %v3357_v13, 0  ;;  %v920_v48 = vsub.s32 0, %v3357_v13  ;;  %v1433_v33 = vmul.f32 %v2824_v60, %v507_v40  ;;  %v2681_v26 = vmul.f32 %v2824_v60, %v1749_v21 }
 0x127   :  { %vm818_vm6 = vcmp.lt.s32.totalorder %v3029_v19, 0  ;;  %v990_v58 = vshll.u32 %v2947_v2, %v984_v51  ;;  %v997_v31 = vshrl.u32 %v2950_v8, %v3354_v46  ;;  %v3388_v30 = vmul.f32 10.0, %v3363_v11 }
 0x128   :  { %v921_v28 = vsel %vm919_vm5, %v920_v48, %v3357_v13  ;;  %2689 = vst [vmem:[#allocation8 + $0x8] sm:$0xff] %v1433_v33  ;;  %v3390_v63 = vshrl.u32 %v982_v54, 5  ;;  %v989_v57 = vor.u32 %v988_v10, %v987_v12  ;;  %v993_v59 = vshll.u32 %v2948_v4, %v984_v51 }
 0x129   :  { %v922_v56 = vclz %v921_v28  ;;  %2697 = vst [vmem:[#allocation8 + $0x18] sm:$0xff] %v2681_v26  ;;  %v996_v1 = vshll.u32 %v2949_v6, %v984_v51  ;;  %v3394_v41 = vor.u32 %v991_v15, %v990_v58  ;;  %v999_v34 = vshll.u32 %v2950_v8, %v984_v51 }
 0x12a   :  { %v1000_v20 = vshrl.u32 %v2951_v17, %v3354_v46  ;;  %vm3401_vm7 = vcmp.le.f32.partialorder %v816_v29, 0.7853982  ;;  %v995_v32 = vor.u32 %v994_v44, %v993_v59  ;;  %v1019_v27 = vand.u32 65535, %v3381_v47 }
 0x12b   :  { %v2737_v5 = vadd.s32 4294967294, %v922_v56  ;;  %v998_v39 = vor.u32 %v997_v31, %v996_v1  ;;  %v508_v3 = vand.u32 2147483647, %v3388_v30  ;;  %v940_v54 = vsub.s32 4, %v3352_v36 }
 0x12c   :  { %v1001_v50 = vor.u32 %v1000_v20, %v999_v34  ;;  %v1020_v51 = vshrl.u32 %v3381_v47, 16  ;;  %vm1002_vm10 = vcmp.lt.s32.totalorder %v3390_v63, 1  ;;  %vm1003_vm14 = vcmp.lt.s32.totalorder %v3390_v63, 2 }
 0x12d   :  { %vm2738_vm8 = vcmp.lt.s32.totalorder %v2737_v5, 0  ;;  %vm1004_vm9 = vcmp.lt.s32.totalorder %v3390_v63, 3  ;;  %vm1005_vm11 = vcmp.lt.s32.totalorder %v3390_v63, 4  ;;  %v1010_v45 = vsel %vm1002_vm10, %v989_v57, %v3394_v41 }
 0x12e   :  { %v925_v14 = vsel %vm2738_vm8, 0, %v2737_v5  ;;  %v1011_v16 = vsel %vm1005_vm11, %v998_v39, 920167782  ;;  %v1014_v18 = vsel %vm1002_vm10, %v3394_v41, %v995_v32  ;;  %v1015_v55 = vsel %vm1005_vm11, %v1001_v50, 1326507024 }
 0x12f   :  { %v926_v29 = vsub.s32 32, %v925_v14  ;;  %v930_v9 = vsub.s32 4294967266, %v925_v14  ;;  %v927_v43 = vshll.u32 %v3357_v13, %v925_v14  ;;  %v1012_v25 = vsel %vm1004_vm9, %v995_v32, %v1011_v16 }
 0x130   :  { %v1016_v24 = vsel %vm1004_vm9, %v998_v39, %v1015_v55  ;;  %v941_v13 = vsel %vm818_vm6, %v940_v54, %v3352_v36  ;;  %v986_v52 = vshrl.u32 %v2946_v0, %v3354_v46  ;;  %v1013_v10 = vsel %vm1003_vm14, %v1010_v45, %v1012_v25 }
 0x131   :  { %v928_v23 = vshrl.u32 %v910_v62, %v926_v29  ;;  %v931_v42 = vadd.s32 127, %v930_v9  ;;  %v1017_v60 = vsel %vm1003_vm14, %v1014_v18, %v1016_v24  ;;  %v1043_v26 = vand.u32 65535, %v1013_v10 }
 0x132   :  { %v1021_v48 = vand.u32 65535, %v1017_v60  ;;  %v1022_v33 = vshrl.u32 %v1017_v60, 16  ;;  %v1044_v62 = vshrl.u32 %v1013_v10, 16  ;;  %v511_v15 = vand.u32 2139095040, %v3388_v30 }
 0x133   :  { %v929_v40 = vor.u32 %v928_v23, %v927_v43  ;;  %v932_v21 = vshll.u32 %v931_v42, 23  ;;  %v3440_v36 = vand.u32 8388607, %v508_v3  ;;  %v943_v46 = vsel %vm3401_vm7, 0, %v941_v13 }
 0x134   :  { %v1006_v12 = vsel %vm1002_vm10, %v986_v52, %v989_v57  ;;  %v1024_v44 = vmul.u32 %v1022_v33, %v1019_v27  ;;  %v1007_v58 = vsel %vm1005_vm11, %v995_v32, 2102212464  ;;  %v1025_v31 = vmul.u32 %v1021_v48, %v1020_v51 }
 0x135   :  { %v933_v28 = vor.u32 4788187, %v932_v21  ;;  %v936_v56 = vcvt.s32.f32 %v929_v40  ;;  %v1046_v59 = vmul.u32 %v1044_v62, %v1019_v27  ;;  %v1023_v5 = vmul.u32 %v1021_v48, %v1019_v27 }
 0x136   :  { %v1027_v34 = vshll.u32 %v1024_v44, 16  ;;  %v1047_v20 = vmul.u32 %v1043_v26, %v1020_v51  ;;  %v1026_v39 = vmul.u32 %v1022_v33, %v1020_v51  ;;  %v1045_v54 = vmul.u32 %v1043_v26, %v1019_v27 }
 0x137   :  { %v934_v1 = vand.u32 2147483647, %v933_v28  ;;  %v1049_v50 = vshll.u32 %v1046_v59, 16  ;;  %v512_v14 = vshrl.u32 %v511_v15, 23  ;;  %v1029_v9 = vshll.u32 %v1025_v31, 16 }
 0x138   :  { %vm1031_vm12 = vc.u32 %v1023_v5, %v1027_v34  ;;  %v1033_v45 = vadd.s32 %v1027_v34, %v1023_v5  ;;  %v1048_v43 = vmul.u32 %v1044_v62, %v1020_v51  ;;  %v1051_v16 = vshll.u32 %v1047_v20, 16 }
 0x139   :  { %v937_v29 = vmul.f32 %v936_v56, %v934_v1  ;;  %v1032_v57 = vsel %vm1031_vm12, 1, %v2952_v22  ;;  %vm1053_vm13 = vc.u32 %v1045_v54, %v1049_v50  ;;  %v1055_v42 = vadd.s32 %v1049_v50, %v1045_v54 }
 0x13a   :  { %v1034_v18 = vadd.s32 %v1032_v57, %v1026_v39  ;;  %vm1035_vm15 = vc.u32 %v1033_v45, %v1029_v9  ;;  %v1054_v55 = vsel %vm1053_vm13, 1, %v2952_v22  ;;  %v2730_v25 = vadd.s32 4294967169, %v512_v14 }
 0x13b   :  { %v938_v32 = vxor.u32 2147483648, %v937_v29  ;;  %v1036_v23 = vsel %vm1035_vm15, 1, %v2952_v22  ;;  %v1056_v27 = vadd.s32 %v1054_v55, %v1048_v43  ;;  %v1008_v13 = vsel %vm1004_vm9, %v3394_v41, %v1007_v58 }
 0x13c   :  { %v1028_v51 = vshrl.u32 %v1024_v44, 16  ;;  %v1038_v52 = vadd.s32 %v1036_v23, %v1034_v18  ;;  %v2204_v60 = vadd.s32 3, %v943_v46  ;;  %vm1057_vm0 = vc.u32 %v1055_v42, %v1051_v16 }
 0x13d   :  { %v939_v24 = vsel %vm818_vm6, %v938_v32, %v937_v29  ;;  %v518_v40 = vadd.s32 1, %v2730_v25  ;;  %v1030_v48 = vshrl.u32 %v1025_v31, 16  ;;  %v1058_v26 = vsel %vm1057_vm0, 1, %v2952_v22 }
 0x13e   :  { %v3459_v10 = vsel %vm3401_vm7, %v3029_v19, %v939_v24  ;;  %v1039_v33 = vadd.s32 %v1038_v52, %v1028_v51  ;;  %v1009_v41 = vsel %vm1003_vm14, %v1006_v12, %v1008_v13  ;;  %v1050_v62 = vshrl.u32 %v1046_v59, 16 }
 0x13f   :  { %v944_v21 = vmul.f32 %v3459_v10, %v3459_v10  ;;  %v1060_v15 = vadd.s32 %v1058_v26, %v1056_v27  ;;  %vm519_vm1 = vcmp.gt.s32.totalorder %v518_v40, 0  ;;  %v3468_v58 = vand.u32 3, %v943_v46 }
 0x140   :  { %v3466_v44 = vadd.s32 %v1039_v33, %v1030_v48  ;;  %v520_v56 = vsel %vm519_vm1, %v518_v40, 0  ;;  %v1052_v1 = vshrl.u32 %v1047_v20, 16  ;;  %v3470_v54 = vand.u32 3, %v2204_v60 }
 0x141   :  { %v945_v28 = vmul.f32 -0.001358992, %v944_v21  ;;  %v952_v7 = vmul.f32 -0.00019511016, %v944_v21  ;;  %v1061_v5 = vadd.s32 %v1060_v15, %v1050_v62  ;;  %v522_v34 = vand.u32 31, %v520_v56 }
 0x142   :  { %v3472_v50 = vadd.s32 %v1055_v42, %v1051_v16  ;;  %v1063_v12 = vmul.u32 %v3381_v47, %v1009_v41  ;;  %v3475_v59 = vshrl.u32 %v520_v56, 5  ;;  %vm965_vm3 = vcmp.eq.s32.totalorder %v3468_v58, 2 }
 0x143   :  { %v946_v31 = vadd.f32 0.041655596, %v945_v28  ;;  %v953_v39 = vadd.f32 0.008332121, %v952_v7  ;;  %v1062_v63 = vadd.s32 %v1061_v5, %v1052_v1  ;;  %v3477_v14 = vsub.s32 32, %v522_v34 }
 0x144   :  { %vm1065_vm2 = vc.u32 %v3466_v44, %v3472_v50  ;;  %v528_v46 = vshll.u32 %v2947_v2, %v522_v34  ;;  %v531_v57 = vshll.u32 %v2948_v4, %v522_v34  ;;  %v534_v43 = vshll.u32 %v2949_v6, %v522_v34 }
 0x145   :  { %v947_v29 = vmul.f32 %v946_v31, %v944_v21  ;;  %v954_v9 = vmul.f32 %v953_v39, %v944_v21  ;;  %v1066_v20 = vadd.s32 1, %v1062_v63  ;;  %v529_v45 = vshrl.u32 %v2948_v4, %v3477_v14 }
 0x146   :  { %v532_v32 = vshrl.u32 %v2949_v6, %v3477_v14  ;;  %v535_v18 = vshrl.u32 %v2950_v8, %v3477_v14  ;;  %vm962_vm4 = vcmp.eq.s32.totalorder %v3468_v58, 0  ;;  %v525_v23 = vshll.u32 %v2946_v0, %v522_v34 }
 0x147   :  { %v948_v47 = vadd.f32 -0.4999988, %v947_v29  ;;  %v955_v16 = vadd.f32 -0.16666654, %v954_v9  ;;  %v1067_v55 = vsel %vm1065_vm2, %v1066_v20, %v1062_v63  ;;  %v526_v42 = vshrl.u32 %v2947_v2, %v3477_v14 }
 0x148   :  { %v537_v27 = vshll.u32 %v2950_v8, %v522_v34  ;;  %vm961_vm5 = vcmp.lt.s32.totalorder %v3468_v58, 2  ;;  %vm2206_vm6 = vcmp.lt.s32.totalorder %v3470_v54, 2  ;;  %v1068_v13 = vadd.s32 %v1067_v55, %v1063_v12  ;;  %v151_v55 = vpop.f32.mrf.mxu1 }
 0x149   :  { %v949_v25 = vmul.f32 %v948_v47, %v944_v21  ;;  %v956_v24 = vmul.f32 %v955_v16, %v944_v21  ;;  %vm959_vm7 = vweird.f32 %v3029_v19  ;;  %v516_v51 = vor.u32 8388608, %v3440_v36 }
 0x14a   :  { %v3500_v52 = vor.u32 %v529_v45, %v528_v46  ;;  %v3502_v60 = vor.u32 %v532_v32, %v531_v57  ;;  %v538_v40 = vshrl.u32 %v2951_v17, %v3477_v14  ;;  %v1069_v26 = vadd.s32 536870912, %v1068_v13 }
 0x14b   :  { %v950_v48 = vadd.f32 1.0, %v949_v25  ;;  %v957_v33 = vadd.f32 1.0, %v956_v24  ;;  %v536_v21 = vor.u32 %v535_v18, %v534_v43  ;;  %v3506_v41 = vor.u32 %v526_v42, %v525_v23 }
 0x14c   :  { %v539_v62 = vor.u32 %v538_v40, %v537_v27  ;;  %vm540_vm8 = vcmp.lt.s32.totalorder %v3475_v59, 1  ;;  %vm543_vm10 = vcmp.lt.s32.totalorder %v3475_v59, 4  ;;  %v3511_v28 = vshrl.u32 %v1069_v26, 30 }
 0x14d   :  { %v958_v36 = vmul.f32 %v957_v33, %v3459_v10  ;;  %v966_v15 = vxor.u32 2147483648, %v950_v48  ;;  %vm542_vm14 = vcmp.lt.s32.totalorder %v3475_v59, 3  ;;  %vm2207_vm9 = vcmp.eq.s32.totalorder %v3470_v54, 0 }
 0x14e   :  { %vm2210_vm11 = vcmp.eq.s32.totalorder %v3470_v54, 2  ;;  %v553_v7 = vsel %vm543_vm10, %v539_v62, 1326507024  ;;  %v3518_v56 = vshll.u32 %v516_v51, 8  ;;  %v1071_v5 = vshll.u32 %v3511_v28, 30 }
 0x14f   :  { %v963_v1 = vxor.u32 2147483648, %v958_v36  ;;  %v549_v10 = vsel %vm543_vm10, %v536_v21, 920167782  ;;  %v552_v34 = vsel %vm540_vm8, %v3500_v52, %v3502_v60  ;;  %v967_v31 = vsel %vm965_vm3, %v966_v15, %v958_v36 }
 0x150   :  { %vm541_vm12 = vcmp.lt.s32.totalorder %v3475_v59, 2  ;;  %v548_v39 = vsel %vm540_vm8, %v3506_v41, %v3500_v52  ;;  %v554_v63 = vsel %vm542_vm14, %v536_v21, %v553_v7  ;;  %v2212_v9 = vsel %vm2210_vm11, %v966_v15, %v958_v36 }
 0x151   :  { %v964_v12 = vsel %vm962_vm4, %v950_v48, %v963_v1  ;;  %v2209_v29 = vsel %vm2207_vm9, %v950_v48, %v963_v1  ;;  %v1072_v46 = vsub.s32 %v1068_v13, %v1071_v5  ;;  %v550_v57 = vsel %vm542_vm14, %v3502_v60, %v549_v10 }
 0x152   :  { %v968_v20 = vsel %vm961_vm5, %v964_v12, %v967_v31  ;;  %v2213_v45 = vsel %vm2206_vm6, %v2209_v29, %v2212_v9  ;;  %v555_v43 = vsel %vm541_vm12, %v552_v34, %v554_v63  ;;  %v551_v25 = vsel %vm541_vm12, %v548_v39, %v550_v57 }
 0x153   :  { %v969_v47 = vsel %vm959_vm7, nan, %v968_v20  ;;  %v2214_v16 = vsel %vm959_vm7, nan, %v2213_v45  ;;  %vm1073_vm13 = vcmp.lt.s32.totalorder %v1072_v46, 0  ;;  %v1074_v32 = vsub.s32 0, %v1072_v46 }
 0x154   :  { %v1436_v58 = vmul.f32 %v3371_v49, %v969_v47  ;;  %v2684_v54 = vmul.f32 %v3371_v49, %v2214_v16  ;;  %v559_v18 = vand.u32 65535, %v555_v43  ;;  %v560_v42 = vshrl.u32 %v555_v43, 16 }
 0x155   :  { %v1075_v23 = vsel %vm1073_vm13, %v1074_v32, %v1072_v46  ;;  %v557_v24 = vand.u32 65535, %v3518_v56  ;;  %v558_v19 = vshrl.u32 %v3518_v56, 16  ;;  %v3558_v13 = vadd.f32 %v151_v55, %v2987_v38 }
 0x156   :  { %2692 = vst [vmem:[#allocation8 + $0x40] sm:$0xff] %v1436_v58  ;;  %v1076_v27 = vclz %v1075_v23  ;;  %v3562_v48 = vmul.f32 %v3207_v35, %v3207_v35  ;;  %v581_v33 = vand.u32 65535, %v551_v25  ;;  %v582_v62 = vshrl.u32 %v551_v25, 16 }
 0x157   :  { %2700 = vst [vmem:[#allocation8 + $0x50] sm:$0xff] %v2684_v54  ;;  %v562_v40 = vmul.u32 %v560_v42, %v557_v24  ;;  %v563_v49 = vmul.u32 %v559_v18, %v558_v19  ;;  %v561_v26 = vmul.u32 %v559_v18, %v557_v24  ;;  %v1064_v36 = vadd.s32 %v3472_v50, %v3466_v44 }
 0x158   :  { %v2740_v51 = vadd.s32 4294967294, %v1076_v27  ;;  %v564_v7 = vmul.u32 %v560_v42, %v558_v19  ;;  %v3567_v1 = vmul.f32 10.0, %v3558_v13  ;;  %v584_v39 = vmul.u32 %v582_v62, %v557_v24 }
 0x159   :  { %v565_v21 = vshll.u32 %v562_v40, 16  ;;  %v567_v34 = vshll.u32 %v563_v49, 16  ;;  %v585_v63 = vmul.u32 %v581_v33, %v558_v19  ;;  %v566_v45 = vshrl.u32 %v562_v40, 16 }
 0x15a   :  { %vm2741_vm15 = vcmp.lt.s32.totalorder %v2740_v51, 0  ;;  %v583_v44 = vmul.u32 %v581_v33, %v557_v24  ;;  %v587_v50 = vshll.u32 %v584_v39, 16  ;;  %v586_v16 = vmul.u32 %v582_v62, %v558_v19 }
 0x15b   :  { %v1079_v15 = vsel %vm2741_vm15, 0, %v2740_v51  ;;  %vm569_vm0 = vc.u32 %v561_v26, %v565_v21  ;;  %v571_v31 = vadd.s32 %v565_v21, %v561_v26  ;;  %v589_v58 = vshll.u32 %v585_v63, 16 }
 0x15c   :  { %v1080_v5 = vsub.s32 32, %v1079_v15  ;;  %v1084_v10 = vsub.s32 4294967266, %v1079_v15  ;;  %v570_v35 = vsel %vm569_vm0, 1, %v2952_v22  ;;  %v1081_v12 = vshll.u32 %v1072_v46, %v1079_v15 }
 0x15d   :  { %v572_v20 = vadd.s32 %v570_v35, %v564_v7  ;;  %vm573_vm1 = vc.u32 %v571_v31, %v567_v34  ;;  %vm591_vm2 = vc.u32 %v583_v44, %v587_v50  ;;  %v593_v54 = vadd.s32 %v587_v50, %v583_v44 }
 0x15e   :  { %v1082_v29 = vshrl.u32 %v1064_v36, %v1080_v5  ;;  %v1085_v9 = vadd.s32 127, %v1084_v10  ;;  %v574_v47 = vsel %vm573_vm1, 1, %v2952_v22  ;;  %v524_v46 = vshrl.u32 %v2946_v0, %v3477_v14 }
 0x15f   :  { %v576_v32 = vadd.s32 %v574_v47, %v572_v20  ;;  %v545_v55 = vsel %vm543_vm10, %v3502_v60, 2102212464  ;;  %v592_v23 = vsel %vm591_vm2, 1, %v2952_v22  ;;  %v1094_v42 = vsub.s32 4, %v3511_v28 }
 0x160   :  { %v1083_v57 = vor.u32 %v1082_v29, %v1081_v12  ;;  %v1086_v43 = vshll.u32 %v1085_v9, 23  ;;  %v594_v25 = vadd.s32 %v592_v23, %v586_v16  ;;  %vm595_vm3 = vc.u32 %v593_v54, %v589_v58  ;;  %v128_v16 = vpop.f32.mrf.mxu2 }
 0x161   :  { %v577_v27 = vadd.s32 %v576_v32, %v566_v45  ;;  %v568_v51 = vshrl.u32 %v563_v49, 16  ;;  %v596_v40 = vsel %vm595_vm3, 1, %v2952_v22  ;;  %vm972_vm4 = vcmp.lt.s32.totalorder %v3249_v61, 0 }
 0x162   :  { %v1087_v18 = vor.u32 4788187, %v1086_v43  ;;  %v1090_v19 = vcvt.s32.f32 %v1083_v57  ;;  %v588_v33 = vshrl.u32 %v584_v39, 16  ;;  %v598_v14 = vadd.s32 %v596_v40, %v594_v25 }
 0x163   :  { %v665_v26 = vand.u32 2139095040, %v3567_v1  ;;  %v544_v60 = vsel %vm540_vm8, %v524_v46, %v3506_v41  ;;  %v546_v62 = vsel %vm542_vm14, %v3500_v52, %v545_v55  ;;  %v3587_v36 = vadd.s32 %v577_v27, %v568_v51 }
 0x164   :  { %v1088_v24 = vand.u32 2147483647, %v1087_v18  ;;  %v1095_v49 = vsel %vm972_vm4, %v1094_v42, %v3511_v28  ;;  %v590_v15 = vshrl.u32 %v585_v63, 16  ;;  %v599_v7 = vadd.s32 %v598_v14, %v588_v33 }
 0x165   :  { %v666_v5 = vshrl.u32 %v665_v26, 23  ;;  %vm971_vm5 = vcmp.le.f32.partialorder %v970_v53, 0.7853982  ;;  %v3594_v34 = vadd.s32 %v593_v54, %v589_v58  ;;  %v547_v41 = vsel %vm541_vm12, %v544_v60, %v546_v62 }
 0x166   :  { %v1091_v21 = vmul.f32 %v1090_v19, %v1088_v24  ;;  %v600_v35 = vadd.s32 %v599_v7, %v590_v15  ;;  %v662_v52 = vand.u32 2147483647, %v3567_v1  ;;  %v181_v39 = vmul.f32 -1600.0, %v3562_v48 }
 0x167   :  { %v2733_v31 = vadd.s32 4294967169, %v666_v5  ;;  %v1097_v63 = vsel %vm971_vm5, 0, %v1095_v49  ;;  %vm603_vm6 = vc.u32 %v3587_v36, %v3594_v34  ;;  %v170_v12 = vmul.f32 %v3363_v11, %v3363_v11 }
 0x168   :  { %v1092_v10 = vxor.u32 2147483648, %v1091_v21  ;;  %v604_v59 = vadd.s32 1, %v600_v35  ;;  %v601_v20 = vmul.u32 %v3518_v56, %v547_v41  ;;  %v2359_v45 = vadd.s32 3, %v1097_v63 }
 0x169   :  { %v672_v29 = vadd.s32 1, %v2733_v31  ;;  %v669_v48 = vand.u32 8388607, %v662_v52  ;;  %v194_v32 = vmul.f32 1.442695, %v181_v39  ;;  %v178_v58 = vmul.f32 -1600.0, %v170_v12 }
 0x16a   :  { %v1093_v28 = vsel %vm972_vm4, %v1092_v10, %v1091_v21  ;;  %v605_v44 = vsel %vm603_vm6, %v604_v59, %v600_v35  ;;  %v3610_v55 = vand.u32 3, %v1097_v63  ;;  %v3612_v56 = vand.u32 3, %v2359_v45 }
 0x16b   :  { %v1096_v53 = vsel %vm971_vm5, %v3249_v61, %v1093_v28  ;;  %vm673_vm7 = vcmp.gt.s32.totalorder %v672_v29, 0  ;;  %v606_v43 = vadd.s32 %v605_v44, %v601_v20  ;;  %v670_v23 = vor.u32 8388608, %v669_v48 }
 0x16c   :  { %v1098_v9 = vmul.f32 %v1096_v53, %v1096_v53  ;;  %v674_v47 = vsel %vm673_vm7, %v672_v29, 0  ;;  %v3615_v42 = vadd.f32 %v128_v16, %v2985_v37  ;;  %v3619_v19 = vmul.f32 1.442695, %v178_v58 }
 0x16d   :  { %v676_v54 = vand.u32 31, %v674_v47  ;;  %v607_v46 = vadd.s32 536870912, %v606_v43  ;;  %2827 = vpow2.f32 %v194_v32  ;;  %vm1116_vm8 = vcmp.eq.s32.totalorder %v3610_v55, 0 }
 0x16e   :  { %v1099_v50 = vmul.f32 -0.001358992, %v1098_v9  ;;  %v1106_v57 = vmul.f32 -0.00019511016, %v1098_v9  ;;  %vm1119_vm10 = vcmp.eq.s32.totalorder %v3610_v55, 2  ;;  %vm2362_vm14 = vcmp.eq.s32.totalorder %v3612_v56, 0 }
 0x16f   :  { %v3617_v24 = vshrl.u32 %v607_v46, 30  ;;  %v3621_v51 = vsub.s32 32, %v676_v54  ;;  %vm2365_vm9 = vcmp.eq.s32.totalorder %v3612_v56, 2  ;;  %v3628_v37 = vshrl.u32 %v674_v47, 5 }
 0x170   :  { %v1100_v11 = vadd.f32 0.041655596, %v1099_v50  ;;  %v1107_v18 = vadd.f32 0.008332121, %v1106_v57  ;;  %v679_v26 = vshll.u32 %v2946_v0, %v676_v54  ;;  %v3631_v21 = vshll.u32 %v670_v23, 8 }
 0x171   :  { %v609_v14 = vshll.u32 %v3617_v24, 30  ;;  %v3634_v60 = vmul.f32 10.0, %v3615_v42  ;;  %vm1115_vm11 = vcmp.lt.s32.totalorder %v3610_v55, 2  ;;  %vm2361_vm12 = vcmp.lt.s32.totalorder %v3612_v56, 2 }
 0x172   :  { %v1101_v27 = vmul.f32 %v1100_v11, %v1098_v9  ;;  %v1108_v25 = vmul.f32 %v1107_v18, %v1098_v9  ;;  %v682_v7 = vshll.u32 %v2947_v2, %v676_v54  ;;  %vm1113_vm13 = vweird.f32 %v3249_v61 }
 0x173   :  { %v3638_v15 = vsub.s32 %v606_v43, %v609_v14  ;;  %v680_v5 = vshrl.u32 %v2947_v2, %v3621_v51  ;;  %v683_v10 = vshrl.u32 %v2948_v4, %v3621_v51  ;;  %v685_v41 = vshll.u32 %v2948_v4, %v676_v54 }
 0x174   :  { %v1102_v40 = vadd.f32 -0.4999988, %v1101_v27  ;;  %v1109_v33 = vadd.f32 -0.16666654, %v1108_v25  ;;  %v686_v35 = vshrl.u32 %v2949_v6, %v3621_v51  ;;  %v688_v63 = vshll.u32 %v2949_v6, %v676_v54 }
 0x175   :  { %vm611_vm15 = vcmp.lt.s32.totalorder %v3638_v15, 0  ;;  %v612_v28 = vsub.s32 0, %v3638_v15  ;;  %v689_v12 = vshrl.u32 %v2950_v8, %v3621_v51  ;;  %v691_v59 = vshll.u32 %v2950_v8, %v676_v54 }
 0x176   :  { %v1103_v62 = vmul.f32 %v1102_v40, %v1098_v9  ;;  %v1110_v49 = vmul.f32 %v1109_v33, %v1098_v9  ;;  %v692_v29 = vshrl.u32 %v2951_v17, %v3621_v51  ;;  %v2828_v9 = vpop.eup %2827  ;;  %v602_v44 = vadd.s32 %v3594_v34, %v3587_v36 }
 0x177   :  { %v613_v48 = vsel %vm611_vm15, %v612_v28, %v3638_v15  ;;  %vm510_vm0 = vcmp.lt.s32.totalorder %v3388_v30, 0  ;;  %v632_v57 = vsub.s32 4, %v3617_v24  ;;  %v3663_v43 = vand.u32 65535, %v3631_v21 }
 0x178   :  { %v1104_v31 = vadd.f32 1.0, %v1103_v62  ;;  %v1111_v39 = vadd.f32 1.0, %v1110_v49  ;;  %v614_v50 = vclz %v613_v48  ;;  %v1127_v47 = vand.u32 2139095040, %v3634_v60 }
 0x179   :  { %v681_v32 = vor.u32 %v680_v5, %v679_v26  ;;  %v3666_v58 = vor.u32 %v683_v10, %v682_v7  ;;  %v690_v11 = vor.u32 %v689_v12, %v688_v63  ;;  %v693_v36 = vor.u32 %v692_v29, %v691_v59 }
 0x17a   :  { %v1112_v20 = vmul.f32 %v1111_v39, %v1096_v53  ;;  %v1120_v45 = vxor.u32 2147483648, %v1104_v31  ;;  %v687_v53 = vor.u32 %v686_v35, %v685_v41  ;;  %v2731_v54 = vadd.s32 4294967294, %v614_v50 }
 0x17b   :  { %vm694_vm1 = vcmp.lt.s32.totalorder %v3628_v37, 1  ;;  %vm3679_vm2 = vcmp.le.f32.partialorder %v508_v3, 0.7853982  ;;  %vm697_vm4 = vcmp.lt.s32.totalorder %v3628_v37, 4  ;;  %vm696_vm5 = vcmp.lt.s32.totalorder %v3628_v37, 3 }
 0x17c   :  { %v1117_v16 = vxor.u32 2147483648, %v1112_v20  ;;  %v1121_v18 = vsel %vm1119_vm10, %v1120_v45, %v1112_v20  ;;  %v2367_v23 = vsel %vm2365_vm9, %v1120_v45, %v1112_v20  ;;  %vm2732_vm3 = vcmp.lt.s32.totalorder %v2731_v54, 0 }
 0x17d   :  { %v617_v26 = vsel %vm2732_vm3, 0, %v2731_v54  ;;  %v678_v55 = vshrl.u32 %v2946_v0, %v3621_v51  ;;  %vm695_vm6 = vcmp.lt.s32.totalorder %v3628_v37, 2  ;;  %v702_v7 = vsel %vm694_vm1, %v681_v32, %v3666_v58 }
 0x17e   :  { %v1118_v34 = vsel %vm1116_vm8, %v1104_v31, %v1117_v16  ;;  %v2364_v46 = vsel %vm2362_vm14, %v1104_v31, %v1117_v16  ;;  %v618_v49 = vsub.s32 32, %v617_v26  ;;  %v622_v56 = vsub.s32 4294967266, %v617_v26 }
 0x17f   :  { %v1122_v25 = vsel %vm1115_vm11, %v1118_v34, %v1121_v18  ;;  %v2368_v40 = vsel %vm2361_vm12, %v2364_v46, %v2367_v23  ;;  %v703_v61 = vsel %vm697_vm4, %v690_v11, 920167782  ;;  %v619_v5 = vshll.u32 %v3638_v15, %v617_v26 }
 0x180   :  { %v1123_v33 = vsel %vm1113_vm13, nan, %v1122_v25  ;;  %v2369_v14 = vsel %vm1113_vm13, nan, %v2368_v40  ;;  %v620_v10 = vshrl.u32 %v602_v44, %v618_v49  ;;  %v704_v41 = vsel %vm696_vm5, %v687_v53, %v703_v61 }
 0x181   :  { %v1437_v3 = vmul.f32 %v2828_v9, %v1123_v33  ;;  %v2685_v62 = vmul.f32 %v2828_v9, %v2369_v14  ;;  %v706_v51 = vsel %vm694_vm1, %v3666_v58, %v687_v53  ;;  %v623_v35 = vadd.s32 127, %v622_v56 }
 0x182   :  { %v633_v31 = vsel %vm510_vm0, %v632_v57, %v3617_v24  ;;  %v705_v39 = vsel %vm695_vm6, %v702_v7, %v704_v41  ;;  %v707_v15 = vsel %vm697_vm4, %v693_v36, 1326507024  ;;  %v621_v28 = vor.u32 %v620_v10, %v619_v5 }
 0x183   :  { %2693 = vst [vmem:[#allocation8 + $0x48] sm:$0xff] %v1437_v3  ;;  %v708_v63 = vsel %vm696_vm5, %v690_v11, %v707_v15  ;;  %v735_v12 = vand.u32 65535, %v705_v39  ;;  %v736_v59 = vshrl.u32 %v705_v39, 16  ;;  %v624_v29 = vshll.u32 %v623_v35, 23 }
 0x184   :  { %2701 = vst [vmem:[#allocation8 + $0x58] sm:$0xff] %v2685_v62  ;;  %v709_v9 = vsel %vm695_vm6, %v706_v51, %v708_v63  ;;  %v712_v20 = vshrl.u32 %v3631_v21, 16  ;;  %v1124_v24 = vand.u32 2147483647, %v3634_v60  ;;  %v635_v45 = vsel %vm3679_vm2, 0, %v633_v31 }
 0x185   :  { %v698_v44 = vsel %vm694_vm1, %v678_v55, %v681_v32  ;;  %v713_v48 = vand.u32 65535, %v709_v9  ;;  %v714_v50 = vshrl.u32 %v709_v9, 16  ;;  %v625_v57 = vor.u32 4788187, %v624_v29 }
 0x186   :  { %v699_v16 = vsel %vm697_vm4, %v687_v53, 2102212464  ;;  %v738_v54 = vmul.u32 %v736_v59, %v3663_v43  ;;  %v739_v11 = vmul.u32 %v735_v12, %v712_v20  ;;  %v628_v36 = vcvt.s32.f32 %v621_v28 }
 0x187   :  { %v716_v34 = vmul.u32 %v714_v50, %v3663_v43  ;;  %v717_v18 = vmul.u32 %v713_v48, %v712_v20  ;;  %v1128_v46 = vshrl.u32 %v1127_v47, 23  ;;  %v626_v23 = vand.u32 2147483647, %v625_v57 }
 0x188   :  { %v737_v25 = vmul.u32 %v735_v12, %v3663_v43  ;;  %v740_v40 = vmul.u32 %v736_v59, %v712_v20  ;;  %v741_v33 = vshll.u32 %v738_v54, 16  ;;  %v715_v32 = vmul.u32 %v713_v48, %v3663_v43 }
 0x189   :  { %v718_v14 = vmul.u32 %v714_v50, %v712_v20  ;;  %v719_v26 = vshll.u32 %v716_v34, 16  ;;  %v743_v3 = vshll.u32 %v739_v11, 16  ;;  %v629_v62 = vmul.f32 %v628_v36, %v626_v23 }
 0x18a   :  { %v721_v53 = vshll.u32 %v717_v18, 16  ;;  %vm745_vm7 = vc.u32 %v737_v25, %v741_v33  ;;  %v747_v49 = vadd.s32 %v741_v33, %v737_v25  ;;  %v2742_v7 = vadd.s32 4294967169, %v1128_v46 }
 0x18b   :  { %vm723_vm8 = vc.u32 %v715_v32, %v719_v26  ;;  %v725_v55 = vadd.s32 %v719_v26, %v715_v32  ;;  %v746_v56 = vsel %vm745_vm7, 1, %v2952_v22  ;;  %v630_v47 = vxor.u32 2147483648, %v629_v62 }
 0x18c   :  { %v724_v61 = vsel %vm723_vm8, 1, %v2952_v22  ;;  %v748_v5 = vadd.s32 %v746_v56, %v740_v40  ;;  %vm749_vm10 = vc.u32 %v747_v49, %v743_v3  ;;  %v700_v43 = vsel %vm696_vm5, %v3666_v58, %v699_v16 }
 0x18d   :  { %v726_v10 = vadd.s32 %v724_v61, %v718_v14  ;;  %vm727_vm14 = vc.u32 %v725_v55, %v721_v53  ;;  %v750_v41 = vsel %vm749_vm10, 1, %v2952_v22  ;;  %v631_v51 = vsel %vm510_vm0, %v630_v47, %v629_v62  ;;  %v157_v53 = vpop.f32.mrf.mxu3 }
 0x18e   :  { %v728_v35 = vsel %vm727_vm14, 1, %v2952_v22  ;;  %v742_v31 = vshrl.u32 %v738_v54, 16  ;;  %v752_v39 = vadd.s32 %v750_v41, %v748_v5  ;;  %v634_v15 = vsel %vm3679_vm2, %v3388_v30, %v631_v51 }
 0x18f   :  { %v720_v28 = vshrl.u32 %v716_v34, 16  ;;  %v730_v63 = vadd.s32 %v728_v35, %v726_v10  ;;  %v1134_v12 = vadd.s32 1, %v2742_v7  ;;  %v636_v59 = vmul.f32 %v634_v15, %v634_v15 }
 0x190   :  { %v1894_v58 = vadd.s32 3, %v635_v45  ;;  %v744_v29 = vshrl.u32 %v739_v11, 16  ;;  %v753_v9 = vadd.s32 %v752_v39, %v742_v31  ;;  %v701_v20 = vsel %vm695_vm6, %v698_v44, %v700_v43 }
 0x191   :  { %v722_v48 = vshrl.u32 %v717_v18, 16  ;;  %v731_v50 = vadd.s32 %v730_v63, %v720_v28  ;;  %vm1135_vm9 = vcmp.gt.s32.totalorder %v1134_v12, 0  ;;  %v637_v57 = vmul.f32 -0.001358992, %v636_v59 }
 0x192   :  { %v644_v16 = vmul.f32 -0.00019511016, %v636_v59  ;;  %v754_v54 = vadd.s32 %v753_v9, %v744_v29  ;;  %v1136_v36 = vsel %vm1135_vm9, %v1134_v12, 0  ;;  %v3746_v27 = vadd.s32 %v747_v49, %v743_v3 }
 0x193   :  { %v3744_v46 = vadd.s32 %v731_v50, %v722_v48  ;;  %v1131_v34 = vand.u32 8388607, %v1124_v24  ;;  %v1138_v23 = vand.u32 31, %v1136_v36  ;;  %v638_v11 = vadd.f32 0.041655596, %v637_v57 }
 0x194   :  { %v645_v25 = vadd.f32 0.008332121, %v644_v16  ;;  %v758_v40 = vadd.s32 1, %v754_v54  ;;  %v652_v37 = vand.u32 3, %v635_v45  ;;  %v1895_v44 = vand.u32 3, %v1894_v58 }
 0x195   :  { %v755_v18 = vmul.u32 %v3631_v21, %v701_v20  ;;  %vm757_vm11 = vc.u32 %v3744_v46, %v3746_v27  ;;  %v639_v33 = vmul.f32 %v638_v11, %v636_v59  ;;  %v1132_v3 = vor.u32 8388608, %v1131_v34 }
 0x196   :  { %v646_v32 = vmul.f32 %v645_v25, %v636_v59  ;;  %v759_v14 = vsel %vm757_vm11, %v758_v40, %v754_v54  ;;  %v3753_v62 = vsub.s32 32, %v1138_v23  ;;  %2829 = vpow2.f32 %v3619_v19 }
 0x197   :  { %v760_v26 = vadd.s32 %v759_v14, %v755_v18  ;;  %v640_v49 = vadd.f32 -0.4999988, %v639_v33  ;;  %vm654_vm12 = vcmp.eq.s32.totalorder %v652_v37, 0  ;;  %vm657_vm13 = vcmp.eq.s32.totalorder %v652_v37, 2 }
 0x198   :  { %v647_v55 = vadd.f32 -0.16666654, %v646_v32  ;;  %vm1897_vm15 = vcmp.eq.s32.totalorder %v1895_v44, 0  ;;  %vm1900_vm0 = vcmp.eq.s32.totalorder %v1895_v44, 2  ;;  %vm653_vm1 = vcmp.lt.s32.totalorder %v652_v37, 2 }
 0x199   :  { %v761_v21 = vadd.s32 536870912, %v760_v26  ;;  %v641_v45 = vmul.f32 %v640_v49, %v636_v59  ;;  %vm1896_vm2 = vcmp.lt.s32.totalorder %v1895_v44, 2  ;;  %v3756_v7 = vshrl.u32 %v1136_v36, 5 }
 0x19a   :  { %v648_v56 = vmul.f32 %v647_v55, %v636_v59  ;;  %v3759_v47 = vadd.f32 %v157_v53, %v2987_v38  ;;  %vm651_vm3 = vweird.f32 %v3388_v30  ;;  %v1142_v19 = vshrl.u32 %v2947_v2, %v3753_v62 }
 0x19b   :  { %v3762_v61 = vshrl.u32 %v761_v21, 30  ;;  %v1151_v5 = vshrl.u32 %v2950_v8, %v3753_v62  ;;  %v3768_v43 = vshll.u32 %v1132_v3, 8  ;;  %v642_v10 = vadd.f32 1.0, %v641_v45 }
 0x19c   :  { %v649_v41 = vadd.f32 1.0, %v648_v56  ;;  %v1145_v51 = vshrl.u32 %v2948_v4, %v3753_v62  ;;  %v1148_v38 = vshrl.u32 %v2949_v6, %v3753_v62  ;;  %v1141_v31 = vshll.u32 %v2946_v0, %v1138_v23  ;;  %v2830_v63 = vpop.eup %2829 }
 0x19d   :  { %v763_v35 = vshll.u32 %v3762_v61, 30  ;;  %v1150_v39 = vshll.u32 %v2949_v6, %v1138_v23  ;;  %v1154_v28 = vshrl.u32 %v2951_v17, %v3753_v62  ;;  %v658_v59 = vxor.u32 2147483648, %v642_v10 }
 0x19e   :  { %v650_v12 = vmul.f32 %v649_v41, %v634_v15  ;;  %v1144_v58 = vshll.u32 %v2947_v2, %v1138_v23  ;;  %v1147_v29 = vshll.u32 %v2948_v4, %v1138_v23  ;;  %v1143_v20 = vor.u32 %v1142_v19, %v1141_v31 }
 0x19f   :  { %v764_v9 = vsub.s32 %v760_v26, %v763_v35  ;;  %v1152_v48 = vor.u32 %v1151_v5, %v1150_v39  ;;  %v1153_v50 = vshll.u32 %v2950_v8, %v1138_v23  ;;  %vm1156_vm4 = vcmp.lt.s32.totalorder %v3756_v7, 1 }
 0x1a0   :  { %v655_v57 = vxor.u32 2147483648, %v650_v12  ;;  %v3782_v16 = vor.u32 %v1145_v51, %v1144_v58  ;;  %v1149_v54 = vor.u32 %v1148_v38, %v1147_v29  ;;  %vm1159_vm6 = vcmp.lt.s32.totalorder %v3756_v7, 4 }
 0x1a1   :  { %vm765_vm5 = vcmp.lt.s32.totalorder %v764_v9, 0  ;;  %v766_v36 = vsub.s32 0, %v764_v9  ;;  %v1155_v34 = vor.u32 %v1154_v28, %v1153_v50  ;;  %v659_v11 = vsel %vm657_vm13, %v658_v59, %v650_v12 }
 0x1a2   :  { %v656_v15 = vsel %vm654_vm12, %v642_v10, %v655_v57  ;;  %v1899_v25 = vsel %vm1897_vm15, %v642_v10, %v655_v57  ;;  %v1902_v40 = vsel %vm1900_vm0, %v658_v59, %v650_v12  ;;  %v1165_v32 = vsel %vm1159_vm6, %v1152_v48, 920167782 }
 0x1a3   :  { %v660_v23 = vsel %vm653_vm1, %v656_v15, %v659_v11  ;;  %v1903_v18 = vsel %vm1896_vm2, %v1899_v25, %v1902_v40  ;;  %v767_v33 = vsel %vm765_vm5, %v766_v36, %v764_v9  ;;  %v1164_v53 = vsel %vm1156_vm4, %v1143_v20, %v3782_v16 }
 0x1a4   :  { %v661_v14 = vsel %vm651_vm3, nan, %v660_v23  ;;  %v1904_v26 = vsel %vm651_vm3, nan, %v1903_v18  ;;  %v768_v3 = vclz %v767_v33  ;;  %vm1158_vm7 = vcmp.lt.s32.totalorder %v3756_v7, 3 }
 0x1a5   :  { %v1434_v49 = vmul.f32 %v2830_v63, %v661_v14  ;;  %v2682_v37 = vmul.f32 %v2830_v63, %v1904_v26  ;;  %vm1157_vm8 = vcmp.lt.s32.totalorder %v3756_v7, 2  ;;  %v1166_v55 = vsel %vm1158_vm7, %v1149_v54, %v1165_v32 }
 0x1a6   :  { %v2734_v44 = vadd.s32 4294967294, %v768_v3  ;;  %v3807_v30 = vmul.f32 %v3558_v13, %v3558_v13  ;;  %v1167_v21 = vsel %vm1157_vm8, %v1164_v53, %v1166_v55  ;;  %v1168_v45 = vsel %vm1156_vm4, %v3782_v16, %v1149_v54 }
 0x1a7   :  { %2690 = vst [vmem:[#allocation8 + $0x20] sm:$0xff] %v1434_v49  ;;  %v3815_v56 = vmul.f32 10.0, %v3759_v47  ;;  %v756_v19 = vadd.s32 %v3746_v27, %v3744_v46  ;;  %v1169_v5 = vsel %vm1159_vm6, %v1155_v34, 1326507024  ;;  %v1173_v13 = vand.u32 65535, %v3768_v43 }
 0x1a8   :  { %2698 = vst [vmem:[#allocation8 + $0x30] sm:$0xff] %v2682_v37  ;;  %vm2735_vm10 = vcmp.lt.s32.totalorder %v2734_v44, 0  ;;  %v1170_v41 = vsel %vm1158_vm7, %v1152_v48, %v1169_v5  ;;  %v1197_v51 = vand.u32 65535, %v1167_v21  ;;  %v1198_v38 = vshrl.u32 %v1167_v21, 16 }
 0x1a9   :  { %v771_v10 = vsel %vm2735_vm10, 0, %v2734_v44  ;;  %v1171_v39 = vsel %vm1157_vm8, %v1168_v45, %v1170_v41  ;;  %v1174_v28 = vshrl.u32 %v3768_v43, 16  ;;  %v1140_v46 = vshrl.u32 %v2946_v0, %v3753_v62 }
 0x1aa   :  { %v772_v35 = vsub.s32 32, %v771_v10  ;;  %v776_v31 = vsub.s32 4294967266, %v771_v10  ;;  %v1175_v27 = vand.u32 65535, %v1171_v39  ;;  %v1176_v63 = vshrl.u32 %v1171_v39, 16 }
 0x1ab   :  { %v1200_v12 = vmul.u32 %v1198_v38, %v1173_v13  ;;  %v773_v59 = vshll.u32 %v764_v9, %v771_v10  ;;  %v1201_v50 = vmul.u32 %v1197_v51, %v1174_v28  ;;  %v786_v48 = vsub.s32 4, %v3762_v61 }
 0x1ac   :  { %v774_v58 = vshrl.u32 %v756_v19, %v772_v35  ;;  %v777_v29 = vadd.s32 127, %v776_v31  ;;  %v1160_v57 = vsel %vm1156_vm4, %v1140_v46, %v1143_v20  ;;  %v1178_v36 = vmul.u32 %v1176_v63, %v1173_v13 }
 0x1ad   :  { %v1179_v34 = vmul.u32 %v1175_v27, %v1174_v28  ;;  %v1161_v25 = vsel %vm1159_vm6, %v1149_v54, 2102212464  ;;  %v1203_v62 = vshll.u32 %v1200_v12, 16  ;;  %v1177_v40 = vmul.u32 %v1175_v27, %v1173_v13 }
 0x1ae   :  { %v775_v15 = vor.u32 %v774_v58, %v773_v59  ;;  %v778_v11 = vshll.u32 %v777_v29, 23  ;;  %v1181_v23 = vshll.u32 %v1178_v36, 16  ;;  %v1199_v18 = vmul.u32 %v1197_v51, %v1173_v13 }
 0x1af   :  { %v1202_v9 = vmul.u32 %v1198_v38, %v1174_v28  ;;  %v1180_v32 = vmul.u32 %v1176_v63, %v1174_v28  ;;  %v1183_v14 = vshll.u32 %v1179_v34, 16  ;;  %v1205_v26 = vshll.u32 %v1201_v50, 16 }
 0x1b0   :  { %v779_v33 = vor.u32 4788187, %v778_v11  ;;  %vm1185_vm14 = vc.u32 %v1177_v40, %v1181_v23  ;;  %v1187_v3 = vadd.s32 %v1181_v23, %v1177_v40  ;;  %vm1207_vm9 = vc.u32 %v1199_v18, %v1203_v62 }
 0x1b1   :  { %v1209_v20 = vadd.s32 %v1203_v62, %v1199_v18  ;;  %v782_v49 = vcvt.s32.f32 %v775_v15  ;;  %v1186_v37 = vsel %vm1185_vm14, 1, %v2952_v22  ;;  %v1208_v44 = vsel %vm1207_vm9, 1, %v2952_v22 }
 0x1b2   :  { %v780_v53 = vand.u32 2147483647, %v779_v33  ;;  %v1188_v54 = vadd.s32 %v1186_v37, %v1180_v32  ;;  %vm1189_vm11 = vc.u32 %v1187_v3, %v1183_v14  ;;  %v1210_v55 = vadd.s32 %v1208_v44, %v1202_v9 }
 0x1b3   :  { %vm1211_vm12 = vc.u32 %v1209_v20, %v1205_v26  ;;  %v1162_v45 = vsel %vm1158_vm7, %v3782_v16, %v1161_v25  ;;  %v1190_v19 = vsel %vm1189_vm11, 1, %v2952_v22  ;;  %v1182_v13 = vshrl.u32 %v1178_v36, 16 }
 0x1b4   :  { %v783_v21 = vmul.f32 %v782_v49, %v780_v53  ;;  %v1212_v5 = vsel %vm1211_vm12, 1, %v2952_v22  ;;  %v1192_v10 = vadd.s32 %v1190_v19, %v1188_v54  ;;  %v1204_v41 = vshrl.u32 %v1200_v12, 16 }
 0x1b5   :  { %v1214_v51 = vadd.s32 %v1212_v5, %v1210_v55  ;;  %vm3843_vm13 = vcmp.le.f32.partialorder %v662_v52, 0.7853982  ;;  %vm664_vm15 = vcmp.lt.s32.totalorder %v3567_v1, 0  ;;  %v1281_v31 = vand.u32 2139095040, %v3815_v56 }
 0x1b6   :  { %v784_v35 = vxor.u32 2147483648, %v783_v21  ;;  %v1184_v16 = vshrl.u32 %v1179_v34, 16  ;;  %v1193_v39 = vadd.s32 %v1192_v10, %v1182_v13  ;;  %v1206_v28 = vshrl.u32 %v1201_v50, 16 }
 0x1b7   :  { %v1215_v46 = vadd.s32 %v1214_v51, %v1204_v41  ;;  %v787_v63 = vsel %vm664_vm15, %v786_v48, %v3762_v61  ;;  %v1163_v12 = vsel %vm1157_vm8, %v1160_v57, %v1162_v45  ;;  %v1282_v59 = vshrl.u32 %v1281_v31, 23 }
 0x1b8   :  { %v785_v27 = vsel %vm664_vm15, %v784_v35, %v783_v21  ;;  %v1194_v58 = vadd.s32 %v1193_v39, %v1184_v16  ;;  %v1213_v29 = vadd.s32 %v1209_v20, %v1205_v26  ;;  %v179_v34 = vmul.f32 -1600.0, %v3807_v30 }
 0x1b9   :  { %v788_v52 = vsel %vm3843_vm13, %v3567_v1, %v785_v27  ;;  %v1216_v36 = vadd.s32 %v1215_v46, %v1206_v28  ;;  %v2745_v11 = vadd.s32 4294967169, %v1282_v59  ;;  %v789_v50 = vsel %vm3843_vm13, 0, %v787_v63 }
 0x1ba   :  { %v790_v15 = vmul.f32 %v788_v52, %v788_v52  ;;  %vm1219_vm0 = vc.u32 %v1194_v58, %v1213_v29  ;;  %v1217_v57 = vmul.u32 %v3768_v43, %v1163_v12  ;;  %v1278_v40 = vand.u32 2147483647, %v3815_v56 }
 0x1bb   :  { %v1220_v61 = vadd.s32 1, %v1216_v36  ;;  %v1288_v25 = vadd.s32 1, %v2745_v11  ;;  %v2049_v33 = vadd.s32 3, %v789_v50  ;;  %v190_v30 = vmul.f32 1.442695, %v179_v34 }
 0x1bc   :  { %v791_v48 = vmul.f32 -0.001358992, %v790_v15  ;;  %v798_v7 = vmul.f32 -0.00019511016, %v790_v15  ;;  %v806_v20 = vand.u32 3, %v789_v50  ;;  %vm805_vm2 = vweird.f32 %v3567_v1 }
 0x1bd   :  { %v1221_v62 = vsel %vm1219_vm0, %v1220_v61, %v1216_v36  ;;  %vm1289_vm1 = vcmp.gt.s32.totalorder %v1288_v25, 0  ;;  %v1285_v53 = vand.u32 8388607, %v1278_v40  ;;  %v2050_v54 = vand.u32 3, %v2049_v33 }
 0x1be   :  { %v792_v23 = vadd.f32 0.041655596, %v791_v48  ;;  %v799_v18 = vadd.f32 0.008332121, %v798_v7  ;;  %v1222_v9 = vadd.s32 %v1221_v62, %v1217_v57  ;;  %v1290_v32 = vsel %vm1289_vm1, %v1288_v25, 0 }
 0x1bf   :  { %v1292_v44 = vand.u32 31, %v1290_v32  ;;  %2831 = vpow2.f32 %v190_v30  ;;  %vm807_vm3 = vcmp.lt.s32.totalorder %v806_v20, 2  ;;  %vm808_vm4 = vcmp.eq.s32.totalorder %v806_v20, 0 }
 0x1c0   :  { %v793_v14 = vmul.f32 %v792_v23, %v790_v15  ;;  %v800_v26 = vmul.f32 %v799_v18, %v790_v15  ;;  %v1223_v3 = vadd.s32 536870912, %v1222_v9  ;;  %vm811_vm5 = vcmp.eq.s32.totalorder %v806_v20, 2 }
 0x1c1   :  { %v1286_v19 = vor.u32 8388608, %v1285_v53  ;;  %v3866_v41 = vsub.s32 32, %v1292_v44  ;;  %vm2051_vm6 = vcmp.lt.s32.totalorder %v2050_v54, 2  ;;  %vm2052_vm7 = vcmp.eq.s32.totalorder %v2050_v54, 0 }
 0x1c2   :  { %v794_v49 = vadd.f32 -0.4999988, %v793_v14  ;;  %v801_v43 = vadd.f32 -0.16666654, %v800_v26  ;;  %v3862_v37 = vshrl.u32 %v1223_v3, 30  ;;  %vm2055_vm8 = vcmp.eq.s32.totalorder %v2050_v54, 2 }
 0x1c3   :  { %v1218_v51 = vadd.s32 %v1213_v29, %v1194_v58  ;;  %v3868_v16 = vshrl.u32 %v1290_v32, 5  ;;  %v1295_v39 = vshll.u32 %v2946_v0, %v1292_v44  ;;  %v1298_v28 = vshll.u32 %v2947_v2, %v1292_v44 }
 0x1c4   :  { %v795_v55 = vmul.f32 %v794_v49, %v790_v15  ;;  %v802_v21 = vmul.f32 %v801_v43, %v790_v15  ;;  %v1225_v45 = vshll.u32 %v3862_v37, 30  ;;  %v3872_v46 = vshll.u32 %v1286_v19, 8 }
 0x1c5   :  { %v2832_v27 = vpop.eup %2831  ;;  %v1296_v59 = vshrl.u32 %v2947_v2, %v3866_v41  ;;  %v1301_v29 = vshll.u32 %v2948_v4, %v1292_v44  ;;  %v1302_v36 = vshrl.u32 %v2949_v6, %v3866_v41  ;;  %v1305_v15 = vshrl.u32 %v2950_v8, %v3866_v41 }
 0x1c6   :  { %v796_v5 = vadd.f32 1.0, %v795_v55  ;;  %v803_v13 = vadd.f32 1.0, %v802_v21  ;;  %v1226_v10 = vsub.s32 %v1222_v9, %v1225_v45  ;;  %v1307_v14 = vshll.u32 %v2950_v8, %v1292_v44 }
 0x1c7   :  { %v1297_v62 = vor.u32 %v1296_v59, %v1295_v39  ;;  %v1303_v30 = vor.u32 %v1302_v36, %v1301_v29  ;;  %vm1310_vm9 = vcmp.lt.s32.totalorder %v3868_v16, 1  ;;  %v1327_v1 = vand.u32 65535, %v3872_v46 }
 0x1c8   :  { %v804_v38 = vmul.f32 %v803_v13, %v788_v52  ;;  %v812_v35 = vxor.u32 2147483648, %v796_v5  ;;  %vm1227_vm10 = vcmp.lt.s32.totalorder %v1226_v10, 0  ;;  %v1228_v31 = vsub.s32 0, %v1226_v10 }
 0x1c9   :  { %v1299_v52 = vshrl.u32 %v2948_v4, %v3866_v41  ;;  %v1304_v4 = vshll.u32 %v2949_v6, %v1292_v44  ;;  %v1308_v6 = vshrl.u32 %v2951_v17, %v3866_v41  ;;  %vm1312_vm11 = vcmp.lt.s32.totalorder %v3868_v16, 3 }
 0x1ca   :  { %v809_v63 = vxor.u32 2147483648, %v804_v38  ;;  %v1229_v12 = vsel %vm1227_vm10, %v1228_v31, %v1226_v10  ;;  %v813_v34 = vsel %vm811_vm5, %v812_v35, %v804_v38  ;;  %v2057_v2 = vsel %vm2055_vm8, %v812_v35, %v804_v38 }
 0x1cb   :  { %v1230_v58 = vclz %v1229_v12  ;;  %v3894_v23 = vor.u32 %v1299_v52, %v1298_v28  ;;  %v1306_v33 = vor.u32 %v1305_v15, %v1304_v4  ;;  %v1309_v20 = vor.u32 %v1308_v6, %v1307_v14 }
 0x1cc   :  { %v810_v11 = vsel %vm808_vm4, %v796_v5, %v809_v63  ;;  %v2054_v50 = vsel %vm2052_vm7, %v796_v5, %v809_v63  ;;  %vm1313_vm12 = vcmp.lt.s32.totalorder %v3868_v16, 4  ;;  %vm1311_vm13 = vcmp.lt.s32.totalorder %v3868_v16, 2 }
 0x1cd   :  { %v814_v61 = vsel %vm807_vm3, %v810_v11, %v813_v34  ;;  %v2058_v48 = vsel %vm2051_vm6, %v2054_v50, %v2057_v2  ;;  %v2743_v7 = vadd.s32 4294967294, %v1230_v58  ;;  %v1318_v8 = vsel %vm1310_vm9, %v1297_v62, %v3894_v23 }
 0x1ce   :  { %v815_v57 = vsel %vm805_vm2, nan, %v814_v61  ;;  %v2059_v25 = vsel %vm805_vm2, nan, %v2058_v48  ;;  %v1319_v43 = vsel %vm1313_vm12, %v1306_v33, 920167782  ;;  %v1322_v54 = vsel %vm1310_vm9, %v3894_v23, %v1303_v30 }
 0x1cf   :  { %v1435_v18 = vmul.f32 %v2832_v27, %v815_v57  ;;  %v2683_v9 = vmul.f32 %v2832_v27, %v2059_v25  ;;  %vm2744_vm14 = vcmp.lt.s32.totalorder %v2743_v7, 0  ;;  %v1320_v44 = vsel %vm1312_vm11, %v1303_v30, %v1319_v43 }
 0x1d0   :  { %v1233_v32 = vsel %vm2744_vm14, 0, %v2743_v7  ;;  %v1323_v55 = vsel %vm1313_vm12, %v1309_v20, 1326507024  ;;  %v1321_v19 = vsel %vm1311_vm13, %v1318_v8, %v1320_v44  ;;  %vm1126_vm15 = vcmp.lt.s32.totalorder %v3634_v60, 0 }
 0x1d1   :  { %2691 = vst [vmem:[#allocation8 + $0x28] sm:$0xff] %v1435_v18  ;;  %v1234_v26 = vsub.s32 32, %v1233_v32  ;;  %v1238_v3 = vsub.s32 4294967266, %v1233_v32  ;;  %v1235_v53 = vshll.u32 %v1226_v10, %v1233_v32  ;;  %v1324_v5 = vsel %vm1312_vm11, %v1306_v33, %v1323_v55 }
 0x1d2   :  { %2699 = vst [vmem:[#allocation8 + $0x38] sm:$0xff] %v2683_v9  ;;  %v1325_v13 = vsel %vm1311_vm13, %v1322_v54, %v1324_v5  ;;  %v1328_v10 = vshrl.u32 %v3872_v46, 16  ;;  %v1352_v38 = vshrl.u32 %v1321_v19, 16  ;;  %vm3926_vm0 = vcmp.le.f32.partialorder %v1124_v24, 0.7853982 }
 0x1d3   :  { %v1236_v49 = vshrl.u32 %v1218_v51, %v1234_v26  ;;  %v1239_v17 = vadd.s32 127, %v1238_v3  ;;  %v1351_v51 = vand.u32 65535, %v1321_v19  ;;  %v1329_v39 = vand.u32 65535, %v1325_v13 }
 0x1d4   :  { %v1330_v28 = vshrl.u32 %v1325_v13, 16  ;;  %v1248_v27 = vsub.s32 4, %v3862_v37  ;;  %v1294_v63 = vshrl.u32 %v2946_v0, %v3866_v41  ;;  %v1354_v12 = vmul.u32 %v1352_v38, %v1327_v1 }
 0x1d5   :  { %v1237_v21 = vor.u32 %v1236_v49, %v1235_v53  ;;  %v1240_v45 = vshll.u32 %v1239_v17, 23  ;;  %v1355_v59 = vmul.u32 %v1351_v51, %v1328_v10  ;;  %v1333_v36 = vmul.u32 %v1329_v39, %v1328_v10 }
 0x1d6   :  { %v1332_v29 = vmul.u32 %v1330_v28, %v1327_v1  ;;  %v1314_v24 = vsel %vm1310_vm9, %v1294_v63, %v1297_v62  ;;  %v1353_v15 = vmul.u32 %v1351_v51, %v1327_v1  ;;  %v1356_v11 = vmul.u32 %v1352_v38, %v1328_v10 }
 0x1d7   :  { %v1241_v31 = vor.u32 4788187, %v1240_v45  ;;  %v1244_v58 = vcvt.s32.f32 %v1237_v21  ;;  %v1357_v34 = vshll.u32 %v1354_v12, 16  ;;  %v1331_v2 = vmul.u32 %v1329_v39, %v1327_v1 }
 0x1d8   :  { %v1334_v61 = vmul.u32 %v1330_v28, %v1328_v10  ;;  %v1335_v48 = vshll.u32 %v1332_v29, 16  ;;  %v1337_v7 = vshll.u32 %v1333_v36, 16  ;;  %v1359_v4 = vshll.u32 %v1355_v59, 16 }
 0x1d9   :  { %v1242_v52 = vand.u32 2147483647, %v1241_v31  ;;  %vm1361_vm1 = vc.u32 %v1353_v15, %v1357_v34  ;;  %v1363_v0 = vadd.s32 %v1357_v34, %v1353_v15  ;;  %v1315_v18 = vsel %vm1313_vm12, %v1303_v30, 2102212464 }
 0x1da   :  { %vm1339_vm2 = vc.u32 %v1331_v2, %v1335_v48  ;;  %v1341_v57 = vadd.s32 %v1335_v48, %v1331_v2  ;;  %v1362_v25 = vsel %vm1361_vm1, 1, %v2952_v22  ;;  %v1358_v3 = vshrl.u32 %v1354_v12, 16 }
 0x1db   :  { %v1245_v50 = vmul.f32 %v1244_v58, %v1242_v52  ;;  %v1340_v62 = vsel %vm1339_vm2, 1, %v2952_v22  ;;  %v1364_v9 = vadd.s32 %v1362_v25, %v1356_v11  ;;  %vm1365_vm3 = vc.u32 %v1363_v0, %v1359_v4 }
 0x1dc   :  { %v1342_v32 = vadd.s32 %v1340_v62, %v1334_v61  ;;  %vm1343_vm4 = vc.u32 %v1341_v57, %v1337_v7  ;;  %v1366_v14 = vsel %vm1365_vm3, 1, %v2952_v22  ;;  %v1316_v20 = vsel %vm1312_vm11, %v3894_v23, %v1315_v18 }
 0x1dd   :  { %v1246_v41 = vxor.u32 2147483648, %v1245_v50  ;;  %v1344_v26 = vsel %vm1343_vm4, 1, %v2952_v22  ;;  %v1368_v1 = vadd.s32 %v1366_v14, %v1364_v9  ;;  %v1336_v8 = vshrl.u32 %v1332_v29, 16 }
 0x1de   :  { %v1346_v53 = vadd.s32 %v1344_v26, %v1342_v32  ;;  %v174_v49 = vmul.f32 %v3615_v42, %v3615_v42  ;;  %v1249_v17 = vsel %vm1126_vm15, %v1248_v27, %v3862_v37  ;;  %v1360_v43 = vshrl.u32 %v1355_v59, 16 }
 0x1df   :  { %v1247_v33 = vsel %vm1126_vm15, %v1246_v41, %v1245_v50  ;;  %v1369_v44 = vadd.s32 %v1368_v1, %v1358_v3  ;;  %v1338_v55 = vshrl.u32 %v1333_v36, 16  ;;  %v1317_v45 = vsel %vm1311_vm13, %v1314_v24, %v1316_v20 }
 0x1e0   :  { %v1250_v6 = vsel %vm3926_vm0, %v3634_v60, %v1247_v33  ;;  %v1347_v21 = vadd.s32 %v1346_v53, %v1336_v8  ;;  %v1367_v10 = vadd.s32 %v1363_v0, %v1359_v4  ;;  %v182_v51 = vmul.f32 -1600.0, %v174_v49 }
 0x1e1   :  { %v1252_v30 = vmul.f32 %v1250_v6, %v1250_v6  ;;  %v1370_v19 = vadd.s32 %v1369_v44, %v1360_v43  ;;  %v1251_v42 = vsel %vm3926_vm0, 0, %v1249_v17  ;;  %v1371_v39 = vmul.u32 %v3872_v46, %v1317_v45 }
 0x1e2   :  { %v1348_v13 = vadd.s32 %v1347_v21, %v1338_v55  ;;  %v2514_v16 = vadd.s32 3, %v1251_v42  ;;  %v196_v59 = vmul.f32 1.442695, %v182_v51  ;;  %v1268_v36 = vand.u32 3, %v1251_v42 }
 0x1e3   :  { %v1253_v54 = vmul.f32 -0.001358992, %v1252_v30  ;;  %v1260_v22 = vmul.f32 -0.00019511016, %v1252_v30  ;;  %v1374_v38 = vadd.s32 1, %v1370_v19  ;;  %vm1267_vm12 = vweird.f32 %v3634_v60 }
 0x1e4   :  { %vm1373_vm5 = vc.u32 %v1348_v13, %v1367_v10  ;;  %v2515_v35 = vand.u32 3, %v2514_v16  ;;  %2833 = vpow2.f32 %v196_v59  ;;  %vm1269_vm6 = vcmp.lt.s32.totalorder %v1268_v36, 2 }
 0x1e5   :  { %v1254_v23 = vadd.f32 0.041655596, %v1253_v54  ;;  %v1261_v5 = vadd.f32 0.008332121, %v1260_v22  ;;  %v1375_v28 = vsel %vm1373_vm5, %v1374_v38, %v1370_v19  ;;  %vm1270_vm7 = vcmp.eq.s32.totalorder %v1268_v36, 0 }
 0x1e6   :  { %v1376_v12 = vadd.s32 %v1375_v28, %v1371_v39  ;;  %vm1273_vm8 = vcmp.eq.s32.totalorder %v1268_v36, 2  ;;  %vm2520_vm10 = vcmp.eq.s32.totalorder %v2515_v35, 2  ;;  %vm2516_vm14 = vcmp.lt.s32.totalorder %v2515_v35, 2 }
 0x1e7   :  { %v1255_v37 = vmul.f32 %v1254_v23, %v1252_v30  ;;  %v1262_v31 = vmul.f32 %v1261_v5, %v1252_v30  ;;  %vm2517_vm9 = vcmp.eq.s32.totalorder %v2515_v35, 0  ;;  %v1372_v1 = vadd.s32 %v1367_v10, %v1348_v13 }
 0x1e8   :  { %v1377_v29 = vadd.s32 536870912, %v1376_v12  ;;  %vm1280_vm15 = vcmp.lt.s32.totalorder %v3815_v56, 0  ;;  %vm1279_vm0 = vcmp.le.f32.partialorder %v1278_v40, 0.7853982  ;;  %v175_v5 = vmul.f32 %v3759_v47, %v3759_v47 }
 0x1e9   :  { %v1256_v27 = vadd.f32 -0.4999988, %v1255_v37  ;;  %v1263_v63 = vadd.f32 -0.16666654, %v1262_v31 }
 0x1ea   :  { %v1378_v11 = vshrl.u32 %v1377_v29, 30  ;;  %v2834_v18 = vpop.eup %2833  ;;  %v183_v37 = vmul.f32 -1600.0, %v175_v5 }
 0x1eb   :  { %v1257_v52 = vmul.f32 %v1256_v27, %v1252_v30  ;;  %v1264_v58 = vmul.f32 %v1263_v63, %v1252_v30 }
 0x1ec   :  { %v1379_v2 = vshll.u32 %v1378_v11, 30  ;;  %v1402_v45 = vsub.s32 4, %v1378_v11  ;;  %v198_v16 = vmul.f32 1.442695, %v183_v37 }
 0x1ed   :  { %v1258_v24 = vadd.f32 1.0, %v1257_v52  ;;  %v1265_v15 = vadd.f32 1.0, %v1264_v58 }
 0x1ee   :  { %v1380_v61 = vsub.s32 %v1376_v12, %v1379_v2  ;;  %v1403_v51 = vsel %vm1280_vm15, %v1402_v45, %v1378_v11  ;;  %2835 = vpow2.f32 %v198_v16 }
 0x1ef   :  { %v1266_v34 = vmul.f32 %v1265_v15, %v1250_v6  ;;  %v1274_v50 = vxor.u32 2147483648, %v1258_v24  ;;  %v1405_v31 = vsel %vm1279_vm0, 0, %v1403_v51 }
 0x1f0   :  { %vm1381_vm11 = vcmp.lt.s32.totalorder %v1380_v61, 0  ;;  %v1382_v41 = vsub.s32 0, %v1380_v61  ;;  %v2669_v40 = vadd.s32 3, %v1405_v31  ;;  %v1422_v29 = vand.u32 3, %v1405_v31 }
 0x1f1   :  { %v1271_v46 = vxor.u32 2147483648, %v1266_v34  ;;  %v1275_v48 = vsel %vm1273_vm8, %v1274_v50, %v1266_v34  ;;  %v2522_v7 = vsel %vm2520_vm10, %v1274_v50, %v1266_v34 }
 0x1f2   :  { %v1383_v33 = vsel %vm1381_vm11, %v1382_v41, %v1380_v61  ;;  %v2670_v36 = vand.u32 3, %v2669_v40  ;;  %vm1423_vm1 = vcmp.lt.s32.totalorder %v1422_v29, 2  ;;  %vm1424_vm2 = vcmp.eq.s32.totalorder %v1422_v29, 0 }
 0x1f3   :  { %v1272_v4 = vsel %vm1270_vm7, %v1258_v24, %v1271_v46  ;;  %v2519_v0 = vsel %vm2517_vm9, %v1258_v24, %v1271_v46  ;;  %v1384_v6 = vclz %v1383_v33  ;;  %vm1427_vm3 = vcmp.eq.s32.totalorder %v1422_v29, 2 }
 0x1f4   :  { %v1276_v57 = vsel %vm1269_vm6, %v1272_v4, %v1275_v48  ;;  %v2523_v25 = vsel %vm2516_vm14, %v2519_v0, %v2522_v7  ;;  %vm2671_vm4 = vcmp.lt.s32.totalorder %v2670_v36, 2  ;;  %vm2672_vm5 = vcmp.eq.s32.totalorder %v2670_v36, 0 }
 0x1f5   :  { %v1277_v62 = vsel %vm1267_vm12, nan, %v1276_v57  ;;  %v2524_v9 = vsel %vm1267_vm12, nan, %v2523_v25  ;;  %v2746_v26 = vadd.s32 4294967294, %v1384_v6  ;;  %vm2675_vm6 = vcmp.eq.s32.totalorder %v2670_v36, 2 }
 0x1f6   :  { %v1438_v32 = vmul.f32 %v2834_v18, %v1277_v62  ;;  %v2686_v14 = vmul.f32 %v2834_v18, %v2524_v9  ;;  %vm1421_vm7 = vweird.f32 %v3815_v56 }
 0x1f7   :  { %vm2747_vm13 = vcmp.lt.s32.totalorder %v2746_v26, 0 }
 0x1f8   :  { %2694 = vst [vmem:[#allocation8 + $0x60] sm:$0xff] %v1438_v32  ;;  %v1387_v3 = vsel %vm2747_vm13, 0, %v2746_v26 }
 0x1f9   :  { %2702 = vst [vmem:[#allocation8 + $0x70] sm:$0xff] %v2686_v14  ;;  %v1388_v30 = vsub.s32 32, %v1387_v3  ;;  %v1392_v20 = vsub.s32 4294967266, %v1387_v3  ;;  %v1389_v8 = vshll.u32 %v1380_v61, %v1387_v3  ;;  %v2836_v61 = vpop.eup %2835 }
 0x1fb   :  { %v1390_v53 = vshrl.u32 %v1372_v1, %v1388_v30  ;;  %v1393_v60 = vadd.s32 127, %v1392_v20 }
 0x1fd   :  { %v1391_v49 = vor.u32 %v1390_v53, %v1389_v8  ;;  %v1394_v17 = vshll.u32 %v1393_v60, 23 }
 0x1ff   :  { %v1395_v43 = vor.u32 4788187, %v1394_v17  ;;  %v1398_v54 = vcvt.s32.f32 %v1391_v49 }
 0x201   :  { %v1396_v44 = vand.u32 2147483647, %v1395_v43 }
 0x203   :  { %v1399_v22 = vmul.f32 %v1398_v54, %v1396_v44 }
 0x205   :  { %v1400_v55 = vxor.u32 2147483648, %v1399_v22 }
 0x207   :  { %v1401_v21 = vsel %vm1280_vm15, %v1400_v55, %v1399_v22 }
 0x208   :  { %v1404_v19 = vsel %vm1279_vm0, %v3815_v56, %v1401_v21 }
 0x209   :  { %v1406_v23 = vmul.f32 %v1404_v19, %v1404_v19 }
 0x20b   :  { %v1407_v13 = vmul.f32 -0.001358992, %v1406_v23  ;;  %v1414_v10 = vmul.f32 -0.00019511016, %v1406_v23 }
 0x20d   :  { %v1408_v42 = vadd.f32 0.041655596, %v1407_v13  ;;  %v1415_v38 = vadd.f32 0.008332121, %v1414_v10 }
 0x20f   :  { %v1409_v39 = vmul.f32 %v1408_v42, %v1406_v23  ;;  %v1416_v28 = vmul.f32 %v1415_v38, %v1406_v23 }
 0x211   :  { %v1410_v27 = vadd.f32 -0.4999988, %v1409_v39  ;;  %v1417_v63 = vadd.f32 -0.16666654, %v1416_v28 }
 0x213   :  { %v1411_v12 = vmul.f32 %v1410_v27, %v1406_v23  ;;  %v1418_v59 = vmul.f32 %v1417_v63, %v1406_v23 }
 0x215   :  { %v1412_v52 = vadd.f32 1.0, %v1411_v12  ;;  %v1419_v58 = vadd.f32 1.0, %v1418_v59 }
 0x217   :  { %v1420_v47 = vmul.f32 %v1419_v58, %v1404_v19  ;;  %v1428_v24 = vxor.u32 2147483648, %v1412_v52 }
 0x219   :  { %v1425_v15 = vxor.u32 2147483648, %v1420_v47  ;;  %v1429_v11 = vsel %vm1427_vm3, %v1428_v24, %v1420_v47  ;;  %v2677_v50 = vsel %vm2675_vm6, %v1428_v24, %v1420_v47 }
 0x21b   :  { %v1426_v35 = vsel %vm1424_vm2, %v1412_v52, %v1425_v15  ;;  %v2674_v34 = vsel %vm2672_vm5, %v1412_v52, %v1425_v15 }
 0x21c   :  { %v1430_v2 = vsel %vm1423_vm1, %v1426_v35, %v1429_v11  ;;  %v2678_v46 = vsel %vm2671_vm4, %v2674_v34, %v2677_v50 }
 0x21d   :  { %v1431_v48 = vsel %vm1421_vm7, nan, %v1430_v2  ;;  %v2679_v7 = vsel %vm1421_vm7, nan, %v2678_v46 }
 0x21e   :  { %v1439_v4 = vmul.f32 %v2836_v61, %v1431_v48  ;;  %v2687_v0 = vmul.f32 %v2836_v61, %v2679_v7 }
 0x220   :  { %2695 = vst [vmem:[#allocation8 + $0x68] sm:$0xff] %v1439_v4 }
 0x221   :  { %2703 = vst [vmem:[#allocation8 + $0x78] sm:$0xff] %v2687_v0 }
 0x222   :  { %2716 = dma.vmem_to_hbm [thread:$0]  %s2709_s2, 2048, %s2711_s5, [#allocation4], %s2954_s6, %s2954_s6, %s2955_s7  }
 0x223   :  { %2937 = dma.done.wait [#allocation4], 2048  }
 0x224   :  { %2938 = vsyncadd [#allocation4], 4294965248 }
 0x225   :  { %2721 = vsyncpa [#allocation3], 1 }
 0x226   :  { %2722 = vsyncpa [#allocation6], 1 }
 0x227   :  { %2723 = vsyncpa [#allocation4], 1 }

</bundles_post_ra>
